<compile_context>
chip_gen: v7x
topology: tpu7x:2x2x1
jax: 0.10.0
libtpu: 0.0.40
codegen_flags: <defaults>
</compile_context>

<pallas_src>
import jax
import jax.numpy as jnp
from jax.experimental import pallas as pl
from jax.experimental.pallas import tpu as pltpu

INPUT_DIM = 28 * 28          # 784
HIDDEN_LAYERS = [256, 128, 64]
OUTPUT_DIM = 10

H3_PAD = 128                 # layer-3 width padded 64 -> 128 (lane-full)
OUT_PAD = 128                # output width padded 10 -> 128 (lane-dense stores)


def _round_up(n, m):
    return ((n + m - 1) // m) * m


def _choose_block_b(Bp, block_b, min_steps=2):
    """Pick the batch tile: a multiple of 128 that divides Bp, as large as
    possible but <= block_b, preferring >= min_steps grid steps so v7x's two
    TensorCores both get work (v5e/v6e unaffected)."""
    n = Bp // 128
    divs = [d for d in range(1, n + 1) if n % d == 0 and 128 * d <= block_b]
    if not divs:
        return 128
    multi = [d for d in divs if n // d >= min_steps]
    return 128 * (max(multi) if multi else max(divs))


def _mlp_kernel(x_ref,
                w1_ref, b1_ref,
                w2_ref, b2_ref,
                w3_ref, b3_ref,
                w4_ref, b4_ref,
                o_ref):
    """Fused MLP forward. bf16 operands into the MXU, f32 accumulation,
    f32 bias add + ReLU, bf16 re-cast for the next matmul."""
    # In-kernel bf16 cast of the f32 input tile (VPU work hidden under DMA).
    x = x_ref[...].astype(jnp.bfloat16)                       # (bb, 784)

    # Layer 1: Linear(784 -> 256) + ReLU   (Dropout p=0.5 -> identity in eval)
    h = jnp.dot(x, w1_ref[...], preferred_element_type=jnp.float32) + b1_ref[...]
    h = jnp.maximum(h, 0.0).astype(jnp.bfloat16)

    # Layer 2: Linear(256 -> 128) + ReLU   (Dropout p=0.3 -> identity in eval)
    h = jnp.dot(h, w2_ref[...], preferred_element_type=jnp.float32) + b2_ref[...]
    h = jnp.maximum(h, 0.0).astype(jnp.bfloat16)

    # Layer 3: Linear(128 -> 64, padded to 128) + ReLU (Dropout p=0.1 -> identity)
    h = jnp.dot(h, w3_ref[...], preferred_element_type=jnp.float32) + b3_ref[...]
    h = jnp.maximum(h, 0.0).astype(jnp.bfloat16)

    # Output layer: Linear(64 -> 10, padded to 128 -> 128), stored bf16.
    out = jnp.dot(h, w4_ref[...], preferred_element_type=jnp.float32) + b4_ref[...]
    o_ref[...] = out.astype(o_ref.dtype)


def prepare_params(params):
    """One-time prep: bf16 weights, f32 biases, zero-pad layer-3 width
    (64 -> 128) and output width (10 -> 128) so every intermediate and the
    output slab is lane-full. Padded columns produce ReLU(0)=0 activations
    which meet zero-padded rows of w4 -> result unchanged."""
    h3 = HIDDEN_LAYERS[2]
    return {
        "w1": params["w1"].astype(jnp.bfloat16),
        "b1": params["b1"].astype(jnp.float32),
        "w2": params["w2"].astype(jnp.bfloat16),
        "b2": params["b2"].astype(jnp.float32),
        "w3": jnp.pad(params["w3"].astype(jnp.bfloat16),
                      ((0, 0), (0, H3_PAD - h3))),
        "b3": jnp.pad(params["b3"].astype(jnp.float32),
                      ((0, 0), (0, H3_PAD - h3))),
        "w4": jnp.pad(params["w4"].astype(jnp.bfloat16),
                      ((0, H3_PAD - h3), (0, OUT_PAD - OUTPUT_DIM))),
        "b4": jnp.pad(params["b4"].astype(jnp.float32),
                      ((0, 0), (0, OUT_PAD - OUTPUT_DIM))),
    }


def adaptive_dropout_mlp(x, prepared, *, block_b=2048):
    """x: (B, 784) float32.  prepared: output of prepare_params().
    Returns (B, 10) float32 logits."""
    B, D = x.shape
    assert D == INPUT_DIM

    # Pad the batch only to a multiple of 128; tile choice absorbs raggedness.
    Bp = _round_up(B, 128)
    bb = _choose_block_b(Bp, block_b)
    xp = x if Bp == B else jnp.pad(x, ((0, Bp - B), (0, 0)))

    w1, b1 = prepared["w1"], prepared["b1"]
    w2, b2 = prepared["w2"], prepared["b2"]
    w3, b3 = prepared["w3"], prepared["b3"]
    w4, b4 = prepared["w4"], prepared["b4"]

    grid = (Bp // bb,)

    def full(shape):
        # whole-array block, constant index map (weights/biases stay resident;
        # constant index map means they are not re-DMA'd across grid steps)
        return pl.BlockSpec(shape, lambda i: tuple(0 for _ in shape))

    # Advisory cost estimate for XLA's scheduler around the custom call.
    mac = (INPUT_DIM * 256 + 256 * 128 + 128 * H3_PAD + H3_PAD * OUT_PAD)
    weight_bytes = 2 * mac + 4 * (256 + 128 + H3_PAD + OUT_PAD)
    cost = pl.CostEstimate(
        flops=2 * Bp * mac,
        transcendentals=0,
        bytes_accessed=Bp * (INPUT_DIM * 4 + OUT_PAD * 2) + weight_bytes,
    )

    out = pl.pallas_call(
        _mlp_kernel,
        out_shape=jax.ShapeDtypeStruct((Bp, OUT_PAD), jnp.bfloat16),
        grid_spec=pltpu.PrefetchScalarGridSpec(
            num_scalar_prefetch=0,
            grid=grid,
            in_specs=[
                pl.BlockSpec((bb, INPUT_DIM), lambda i: (i, 0)),   # x tile (f32)
                full(w1.shape), full(b1.shape),
                full(w2.shape), full(b2.shape),
                full(w3.shape), full(b3.shape),
                full(w4.shape), full(b4.shape),
            ],
            out_specs=pl.BlockSpec((bb, OUT_PAD), lambda i: (i, 0)),
        ),
        compiler_params=pltpu.CompilerParams(
            dimension_semantics=("parallel",),     # sharded across v7x's 2 TCs
            vmem_limit_bytes=48 * 1024 * 1024,     # covers v5e's 16 MiB default
        ),
        cost_estimate=cost,
    )(xp, w1, b1, w2, b2, w3, b3, w4, b4)

    # Slice padding (batch rows and output lanes) off; upcast logits to f32.
    return out[:B, :OUTPUT_DIM].astype(jnp.float32)


def init_params(key):
    """Deterministic init mimicking PyTorch nn.Linear default:
    U(-1/sqrt(fan_in), 1/sqrt(fan_in)).  Weights stored as (in, out)."""
    dims = [INPUT_DIM] + HIDDEN_LAYERS + [OUTPUT_DIM]
    params = {}
    keys = jax.random.split(key, 2 * (len(dims) - 1))
    for li in range(len(dims) - 1):
        fan_in, fan_out = dims[li], dims[li + 1]
        bound = 1.0 / jnp.sqrt(jnp.float32(fan_in))
        wk, bk = keys[2 * li], keys[2 * li + 1]
        params[f"w{li + 1}"] = jax.random.uniform(
            wk, (fan_in, fan_out), jnp.float32, -bound, bound)
        params[f"b{li + 1}"] = jax.random.uniform(
            bk, (1, fan_out), jnp.float32, -bound, bound)
    return params


def _reference_forward(x, params):
    """Pure-JAX reference mirroring the kernel's bf16-operand / f32-accumulate
    math and the final bf16 output store."""
    h = x.astype(jnp.bfloat16)
    for li in range(1, 4):
        w = params[f"w{li}"].astype(jnp.bfloat16)
        b = params[f"b{li}"]
        h = jnp.dot(h, w, preferred_element_type=jnp.float32) + b
        h = jnp.maximum(h, 0.0).astype(jnp.bfloat16)
    w4 = params["w4"].astype(jnp.bfloat16)
    out = jnp.dot(h, w4, preferred_element_type=jnp.float32) + params["b4"]
    return out.astype(jnp.bfloat16).astype(jnp.float32)


if __name__ == "__main__":
    key = jax.random.PRNGKey(0)
    pkey, xkey = jax.random.split(key)
    params = init_params(pkey)
    prepared = prepare_params(params)

    batch = 8
    x = jax.random.normal(xkey, (batch, INPUT_DIM), jnp.float32)

    forward = jax.jit(adaptive_dropout_mlp)
    out = forward(x, prepared)
    out = jax.block_until_ready(out)

    ref = _reference_forward(x, params)
    assert out.shape == (batch, OUTPUT_DIM)
    assert jnp.allclose(out, ref, atol=1e-2, rtol=1e-2), "mismatch vs reference"

    print("KERNEL_OK")
</pallas_src>

<mosaic_0001>
module attributes {stable_mosaic.version = 11 : i64} {
  func.func @_mlp_kernel(%arg0: i32, %arg1: memref<128x784xf32, #tpu.memory_space<vmem>>, %arg2: memref<784x256xbf16, #tpu.memory_space<vmem>>, %arg3: memref<1x256xf32, #tpu.memory_space<vmem>>, %arg4: memref<256x128xbf16, #tpu.memory_space<vmem>>, %arg5: memref<1x128xf32, #tpu.memory_space<vmem>>, %arg6: memref<128x128xbf16, #tpu.memory_space<vmem>>, %arg7: memref<1x128xf32, #tpu.memory_space<vmem>>, %arg8: memref<128x128xbf16, #tpu.memory_space<vmem>>, %arg9: memref<1x128xf32, #tpu.memory_space<vmem>>, %arg10: memref<128x128xbf16, #tpu.memory_space<vmem>>) attributes {dimension_semantics = [#tpu.dimension_semantics<parallel>], iteration_bounds = array<i64: 1>, scalar_prefetch = 0 : i64, scratch_operands = 0 : i64, tpu.core_type = #tpu.core_type<tc>, window_params = [{transform_indices = @transform_0, window_bounds = array<i64: 128, 784>}, {pipeline_mode = #tpu.pipeline_mode<synchronous>, transform_indices = @transform_1, window_bounds = array<i64: 784, 256>}, {pipeline_mode = #tpu.pipeline_mode<synchronous>, transform_indices = @transform_2, window_bounds = array<i64: 1, 256>}, {pipeline_mode = #tpu.pipeline_mode<synchronous>, transform_indices = @transform_3, window_bounds = array<i64: 256, 128>}, {pipeline_mode = #tpu.pipeline_mode<synchronous>, transform_indices = @transform_4, window_bounds = array<i64: 1, 128>}, {pipeline_mode = #tpu.pipeline_mode<synchronous>, transform_indices = @transform_5, window_bounds = array<i64: 128, 128>}, {pipeline_mode = #tpu.pipeline_mode<synchronous>, transform_indices = @transform_6, window_bounds = array<i64: 1, 128>}, {pipeline_mode = #tpu.pipeline_mode<synchronous>, transform_indices = @transform_7, window_bounds = array<i64: 128, 128>}, {pipeline_mode = #tpu.pipeline_mode<synchronous>, transform_indices = @transform_8, window_bounds = array<i64: 1, 128>}, {transform_indices = @transform_9, window_bounds = array<i64: 128, 128>}]} {
    %c0 = arith.constant 0 : index
    %c0_0 = arith.constant 0 : index
    %0 = vector.load %arg1[%c0, %c0_0] : memref<128x784xf32, #tpu.memory_space<vmem>>, vector<128x784xf32>
    %1 = arith.truncf %0 : vector<128x784xf32> to vector<128x784xbf16>
    %c0_1 = arith.constant 0 : index
    %c0_2 = arith.constant 0 : index
    %2 = vector.load %arg2[%c0_1, %c0_2] : memref<784x256xbf16, #tpu.memory_space<vmem>>, vector<784x256xbf16>
    %cst = arith.constant dense<0.000000e+00> : vector<128x256xf32>
    %3 = tpu.matmul %1, %2, %cst {dimension_numbers = #tpu.dot_dimension_numbers<[1], [0], [0], [1], [0, 0, 1, 1], [], []>} : vector<128x784xbf16>, vector<784x256xbf16>, vector<128x256xf32> -> vector<128x256xf32>
    %c0_3 = arith.constant 0 : index
    %c0_4 = arith.constant 0 : index
    %4 = vector.load %arg3[%c0_3, %c0_4] : memref<1x256xf32, #tpu.memory_space<vmem>>, vector<1x256xf32>
    %5 = vector.broadcast %4 : vector<1x256xf32> to vector<128x256xf32>
    %6 = arith.addf %3, %5 : vector<128x256xf32>
    %cst_5 = arith.constant 0.000000e+00 : f32
    %7 = vector.broadcast %cst_5 : f32 to vector<128x256xf32>
    %8 = arith.maximumf %6, %7 : vector<128x256xf32>
    %9 = arith.truncf %8 : vector<128x256xf32> to vector<128x256xbf16>
    %c0_6 = arith.constant 0 : index
    %c0_7 = arith.constant 0 : index
    %10 = vector.load %arg4[%c0_6, %c0_7] : memref<256x128xbf16, #tpu.memory_space<vmem>>, vector<256x128xbf16>
    %cst_8 = arith.constant dense<0.000000e+00> : vector<128x128xf32>
    %11 = tpu.matmul %9, %10, %cst_8 {dimension_numbers = #tpu.dot_dimension_numbers<[1], [0], [0], [1], [0, 0, 1, 1], [], []>} : vector<128x256xbf16>, vector<256x128xbf16>, vector<128x128xf32> -> vector<128x128xf32>
    %c0_9 = arith.constant 0 : index
    %c0_10 = arith.constant 0 : index
    %12 = vector.load %arg5[%c0_9, %c0_10] : memref<1x128xf32, #tpu.memory_space<vmem>>, vector<1x128xf32>
    %13 = vector.broadcast %12 : vector<1x128xf32> to vector<128x128xf32>
    %14 = arith.addf %11, %13 : vector<128x128xf32>
    %cst_11 = arith.constant 0.000000e+00 : f32
    %15 = vector.broadcast %cst_11 : f32 to vector<128x128xf32>
    %16 = arith.maximumf %14, %15 : vector<128x128xf32>
    %17 = arith.truncf %16 : vector<128x128xf32> to vector<128x128xbf16>
    %c0_12 = arith.constant 0 : index
    %c0_13 = arith.constant 0 : index
    %18 = vector.load %arg6[%c0_12, %c0_13] : memref<128x128xbf16, #tpu.memory_space<vmem>>, vector<128x128xbf16>
    %cst_14 = arith.constant dense<0.000000e+00> : vector<128x128xf32>
    %19 = tpu.matmul %17, %18, %cst_14 {dimension_numbers = #tpu.dot_dimension_numbers<[1], [0], [0], [1], [0, 0, 1, 1], [], []>} : vector<128x128xbf16>, vector<128x128xbf16>, vector<128x128xf32> -> vector<128x128xf32>
    %c0_15 = arith.constant 0 : index
    %c0_16 = arith.constant 0 : index
    %20 = vector.load %arg7[%c0_15, %c0_16] : memref<1x128xf32, #tpu.memory_space<vmem>>, vector<1x128xf32>
    %21 = vector.broadcast %20 : vector<1x128xf32> to vector<128x128xf32>
    %22 = arith.addf %19, %21 : vector<128x128xf32>
    %cst_17 = arith.constant 0.000000e+00 : f32
    %23 = vector.broadcast %cst_17 : f32 to vector<128x128xf32>
    %24 = arith.maximumf %22, %23 : vector<128x128xf32>
    %25 = arith.truncf %24 : vector<128x128xf32> to vector<128x128xbf16>
    %c0_18 = arith.constant 0 : index
    %c0_19 = arith.constant 0 : index
    %26 = vector.load %arg8[%c0_18, %c0_19] : memref<128x128xbf16, #tpu.memory_space<vmem>>, vector<128x128xbf16>
    %cst_20 = arith.constant dense<0.000000e+00> : vector<128x128xf32>
    %27 = tpu.matmul %25, %26, %cst_20 {dimension_numbers = #tpu.dot_dimension_numbers<[1], [0], [0], [1], [0, 0, 1, 1], [], []>} : vector<128x128xbf16>, vector<128x128xbf16>, vector<128x128xf32> -> vector<128x128xf32>
    %c0_21 = arith.constant 0 : index
    %c0_22 = arith.constant 0 : index
    %28 = vector.load %arg9[%c0_21, %c0_22] : memref<1x128xf32, #tpu.memory_space<vmem>>, vector<1x128xf32>
    %29 = vector.broadcast %28 : vector<1x128xf32> to vector<128x128xf32>
    %30 = arith.addf %27, %29 : vector<128x128xf32>
    %31 = arith.truncf %30 : vector<128x128xf32> to vector<128x128xbf16>
    %c0_23 = arith.constant 0 : index
    %c0_24 = arith.constant 0 : index
    %32 = vector.load %arg10[%c0_23, %c0_24] : memref<128x128xbf16, #tpu.memory_space<vmem>>, vector<128x128xbf16>
    tpu.vector_store %arg10[%c0_23, %c0_24], %31 {strides = array<i32>} : memref<128x128xbf16, #tpu.memory_space<vmem>>, vector<128x128xbf16>,
    return
  }
  func.func @transform_0(%arg0: i32) -> (i32, i32) {
    %c0_i32 = arith.constant 0 : i32
    %c0_i32_0 = arith.constant 0 : i32
    return %arg0, %c0_i32 : i32, i32
  }
  func.func @transform_1(%arg0: i32) -> (i32, i32) {
    %c0_i32 = arith.constant 0 : i32
    %c0_i32_0 = arith.constant 0 : i32
    %c0_i32_1 = arith.constant 0 : i32
    return %c0_i32, %c0_i32_0 : i32, i32
  }
  func.func @transform_2(%arg0: i32) -> (i32, i32) {
    %c0_i32 = arith.constant 0 : i32
    %c0_i32_0 = arith.constant 0 : i32
    %c0_i32_1 = arith.constant 0 : i32
    return %c0_i32, %c0_i32_0 : i32, i32
  }
  func.func @transform_3(%arg0: i32) -> (i32, i32) {
    %c0_i32 = arith.constant 0 : i32
    %c0_i32_0 = arith.constant 0 : i32
    %c0_i32_1 = arith.constant 0 : i32
    return %c0_i32, %c0_i32_0 : i32, i32
  }
  func.func @transform_4(%arg0: i32) -> (i32, i32) {
    %c0_i32 = arith.constant 0 : i32
    %c0_i32_0 = arith.constant 0 : i32
    %c0_i32_1 = arith.constant 0 : i32
    return %c0_i32, %c0_i32_0 : i32, i32
  }
  func.func @transform_5(%arg0: i32) -> (i32, i32) {
    %c0_i32 = arith.constant 0 : i32
    %c0_i32_0 = arith.constant 0 : i32
    %c0_i32_1 = arith.constant 0 : i32
    return %c0_i32, %c0_i32_0 : i32, i32
  }
  func.func @transform_6(%arg0: i32) -> (i32, i32) {
    %c0_i32 = arith.constant 0 : i32
    %c0_i32_0 = arith.constant 0 : i32
    %c0_i32_1 = arith.constant 0 : i32
    return %c0_i32, %c0_i32_0 : i32, i32
  }
  func.func @transform_7(%arg0: i32) -> (i32, i32) {
    %c0_i32 = arith.constant 0 : i32
    %c0_i32_0 = arith.constant 0 : i32
    %c0_i32_1 = arith.constant 0 : i32
    return %c0_i32, %c0_i32_0 : i32, i32
  }
  func.func @transform_8(%arg0: i32) -> (i32, i32) {
    %c0_i32 = arith.constant 0 : i32
    %c0_i32_0 = arith.constant 0 : i32
    %c0_i32_1 = arith.constant 0 : i32
    return %c0_i32, %c0_i32_0 : i32, i32
  }
  func.func @transform_9(%arg0: i32) -> (i32, i32) {
    %c0_i32 = arith.constant 0 : i32
    %c0_i32_0 = arith.constant 0 : i32
    return %arg0, %c0_i32 : i32, i32
  }
}

</mosaic_0001>

<bundles_post_ra>
// kernel: adaptive_dropout_mlp.1
= control target key start
LH: loop header
LB: loop body
LE: loop exit
PB: predicated region body
PF: predicated region fallthrough
CT: control target
= control target key end

     0   :  { %14 = vsyncpa [#allocation3], 0  ;;  %s3727_s0 = inlined_call_operand.vmem [shape: f32[128,784], index: 0, kind: input, shape index: {}]   ;;  %s3728_s1 = inlined_call_operand.vmem [shape: bf16[784,256], index: 1, kind: input, shape index: {}]   ;;  %s3729_s2 = inlined_call_operand.vmem [shape: f32[1,256], index: 2, kind: input, shape index: {}]   ;;  %s3730_s3 = inlined_call_operand.vmem [shape: bf16[256,128], index: 3, kind: input, shape index: {}]   ;;  %s3731_s4 = inlined_call_operand.vmem [shape: f32[1,128], index: 4, kind: input, shape index: {}]   ;;  %s3732_s5 = inlined_call_operand.hbm [shape: bf16[128,128], index: 5, kind: input, shape index: {}]   ;;  %s3733_s6 = inlined_call_operand.vmem [shape: f32[1,128], index: 6, kind: input, shape index: {}]   ;;  %s3734_s7 = inlined_call_operand.hbm [shape: bf16[128,128], index: 7, kind: input, shape index: {}]   ;;  %s3735_s8 = inlined_call_operand.vmem [shape: f32[1,128], index: 8, kind: input, shape index: {}]   ;;  %s3736_s9 = inlined_call_operand.vmem [shape: bf16[128,128], index: 9, kind: output, shape index: {}]  }
   0x1   :  { %15 = vsyncpa [#allocation5], 0  ;;  %s2796_s30 = smov [#allocation2]   ;;  %s2748_s13 = scalar_lea.hbm %s3732_s5, 1024 }
   0x2   :  { %s31_s10 = sshll.u32 %s2796_s30, 4  ;;  %p2749_p0 = scmp.ne.s32.totalorder %s3732_s5, %s2748_s13  ;;  %s32_s10 = int_to_ptr.vmem [resolvable:$true] %s31_s10 }
   0x3   :  { %p2752_p1 = scmp.lt.u32.totalorder %s2748_s13, %s3732_s5 }
   0x5   :  { %p2754_p2 = pnand %p2752_p1, %p2749_p0 }
   0x7   :  { %2757 = shalt.err (!%p2754_p2)
}
   0x8   :  { %s2758_s18 = scalar_lea.vmem %s32_s10, 1024  ;;  %p2763_p4 = scmp.lt.s32.totalorder %s32_s10, %s32_s10 }
   0x9   :  { %p2759_p3 = scmp.ne.s32.totalorder %s32_s10, %s2758_s18  ;;  %p2764_p5 = scmp.lt.s32.totalorder %s2758_s18, %s2758_s18 }
   0xb   :  { %p2765_p6 = por %p2764_p5, %p2763_p4 }
   0xd   :  { %p2766_p7 = pnand %p2765_p6, %p2759_p3 }
   0xf   :  { %2769 = shalt.err (!%p2766_p7)
}
  0x10   :  { %s2797_s19 = smov 64   ;;  %s2798_s20 = smov 4  }
  0x11   :  { %37 = dma.hbm_to_vmem [thread:$0]  %s3732_s5, 1024, %s32_s10, [#allocation3], %s2797_s19, %s2797_s19, %s2798_s20  }
  0x12   :  { %s2799_s23 = smov [#allocation4]   ;;  %s2770_s27 = scalar_lea.hbm %s3734_s7, 1024 }
  0x13   :  { %s45_s24 = sshll.u32 %s2799_s23, 4  ;;  %p2771_p8 = scmp.ne.s32.totalorder %s3734_s7, %s2770_s27  ;;  %s46_s24 = int_to_ptr.vmem [resolvable:$true] %s45_s24 }
  0x14   :  { %p2774_p9 = scmp.lt.u32.totalorder %s2770_s27, %s3734_s7 }
  0x16   :  { %p2776_p10 = pnand %p2774_p9, %p2771_p8 }
  0x18   :  { %2779 = shalt.err (!%p2776_p10)
}
  0x19   :  { %s2780_s12 = scalar_lea.vmem %s46_s24, 1024  ;;  %p2785_p12 = scmp.lt.s32.totalorder %s46_s24, %s46_s24 }
  0x1a   :  { %p2781_p11 = scmp.ne.s32.totalorder %s46_s24, %s2780_s12  ;;  %p2786_p13 = scmp.lt.s32.totalorder %s2780_s12, %s2780_s12 }
  0x1c   :  { %p2787_p0 = por %p2786_p13, %p2785_p12 }
  0x1e   :  { %p2788_p1 = pnand %p2787_p0, %p2781_p11 }
  0x20   :  { %2791 = shalt.err (!%p2788_p1)
}
  0x21   :  { %51 = dma.hbm_to_vmem [thread:$0]  %s3734_s7, 1024, %s46_s24, [#allocation5], %s2797_s19, %s2797_s19, %s2798_s20  }
  0x22   :  { %2792 = dma.done.wait [#allocation3], 1024  }
  0x23   :  { %2793 = vsyncadd [#allocation3], 4294966272 }
  0x24   :  { %2794 = dma.done.wait [#allocation5], 1024  }
  0x25   :  { %2795 = vsyncadd [#allocation5], 4294966272  ;;  %v2569_v0 = vld [vmem:[%s3728_s1 + $0x104] ss:$8 sps:$4 sm:$0xff]   ;;  %v2571_v1 = vld [vmem:[%s3728_s1 + $0x100] ss:$8 sps:$4 sm:$0xff]  }
  0x26   :  { %967 = vmatprep.subr.bf16.mxu0 %v2569_v0  ;;  %v2572_v2 = vld [vmem:[%s3728_s1 + $0x114] ss:$8 sps:$4 sm:$0xff]   ;;  %v2574_v3 = vld [vmem:[%s3728_s1 + $0x110] ss:$8 sps:$4 sm:$0xff]   ;;  %v2575_v4 = vld [vmem:[%s3728_s1 + $0x124] ss:$8 sps:$4 sm:$0xff]  }
  0x27   :  { %968 = vmatpush1.bf16.msra.mxu0 %v2571_v1  ;;  %v2577_v5 = vld [vmem:[%s3728_s1 + $0x120] ss:$8 sps:$4 sm:$0xff]   ;;  %v2578_v6 = vld [vmem:[%s3728_s1 + $0x134] ss:$8 sps:$4 sm:$0xff]   ;;  %v2580_v7 = vld [vmem:[%s3728_s1 + $0x130] ss:$8 sps:$4 sm:$0xff]  }
  0x28   :  { %969 = vmatprep.subr.bf16.mxu0 %v2572_v2  ;;  %v2581_v8 = vld [vmem:[%s3728_s1 + $0x144] ss:$8 sps:$4 sm:$0xff]   ;;  %v2583_v9 = vld [vmem:[%s3728_s1 + $0x140] ss:$8 sps:$4 sm:$0xff]   ;;  %v2584_v10 = vld [vmem:[%s3728_s1 + $0x154] ss:$8 sps:$4 sm:$0xff]  }
  0x29   :  { %v2586_v11 = vld [vmem:[%s3728_s1 + $0x150] ss:$8 sps:$4 sm:$0xff]   ;;  %v2587_v12 = vld [vmem:[%s3728_s1 + $0x164] ss:$8 sps:$4 sm:$0xff]   ;;  %v2589_v16 = vld [vmem:[%s3728_s1 + $0x160] ss:$8 sps:$4 sm:$0xff]  }
  0x2a   :  { %v64_v13 = vld [vmem:[%s3727_s0 + $0x18] sm:$0xff]  ;;  %v71_v14 = vld [vmem:[%s3727_s0 + $0x50] sm:$0xff]  ;;  %v2593_v19 = vld [vmem:[%s3728_s1 + $0x184] ss:$8 sps:$4 sm:$0xff]   ;;  %vm829_vm0 = vcmask 130048  }
  0x2b   :  { %970 = vmatpush1.bf16.msra.mxu0 %v2574_v3  ;;  %v176_v15 = vpack.c.bf16 %v71_v14, %v64_v13  ;;  %v2590_v17 = vld [vmem:[%s3728_s1 + $0x174] ss:$8 sps:$4 sm:$0xff]   ;;  %v2592_v18 = vld [vmem:[%s3728_s1 + $0x170] ss:$8 sps:$4 sm:$0xff]   ;;  %v2595_v20 = vld [vmem:[%s3728_s1 + $0x180] ss:$8 sps:$4 sm:$0xff]  }
  0x2c   :  { %971 = vmatprep.subr.bf16.mxu0 %v2575_v4  ;;  %v2596_v21 = vld [vmem:[%s3728_s1 + $0x194] ss:$8 sps:$4 sm:$0xff]   ;;  %v2598_v22 = vld [vmem:[%s3728_s1 + $0x190] ss:$8 sps:$4 sm:$0xff]   ;;  %v2599_v23 = vld [vmem:[%s3728_s1 + $0x1a4] ss:$8 sps:$4 sm:$0xff]  }
  0x2d   :  { %999 = vmatprep.mubr.bf16.mxu0 %v176_v15  ;;  %v2601_v24 = vld [vmem:[%s3728_s1 + $0x1a0] ss:$8 sps:$4 sm:$0xff]   ;;  %v2602_v25 = vld [vmem:[%s3728_s1 + $0x1b4] ss:$8 sps:$4 sm:$0xff]   ;;  %v2604_v26 = vld [vmem:[%s3728_s1 + $0x1b0] ss:$8 sps:$4 sm:$0xff]  }
  0x2e   :  { %v2605_v27 = vld [vmem:[%s3728_s1 + $0x1c4] ss:$8 sps:$4 sm:$0xff]   ;;  %v2607_v28 = vld [vmem:[%s3728_s1 + $0x1c0] ss:$8 sps:$4 sm:$0xff]   ;;  %v2608_v29 = vld [vmem:[%s3728_s1 + $0x1d4] ss:$8 sps:$4 sm:$0xff]  }
  0x2f   :  { %972 = vmatpush1.bf16.msra.mxu0 %v2577_v5  ;;  %v2610_v30 = vld [vmem:[%s3728_s1 + $0x1d0] ss:$8 sps:$4 sm:$0xff]   ;;  %v2611_v31 = vld [vmem:[%s3728_s1 + $0x1e4] ss:$8 sps:$4 sm:$0xff]   ;;  %v2667_v33 = vld [vmem:[%s3728_s1] ss:$8 sps:$4 sm:$0xff]  }
  0x30   :  { %973 = vmatprep.subr.bf16.mxu0 %v2578_v6  ;;  %v2662_v32 = vld [vmem:[%s3728_s1 + $0x4] ss:$8 sps:$4 sm:$0xff]   ;;  %v2613_v34 = vld [vmem:[%s3728_s1 + $0x1e0] ss:$8 sps:$4 sm:$0xff]   ;;  %v2614_v35 = vld [vmem:[%s3728_s1 + $0x1f4] ss:$8 sps:$4 sm:$0xff]  }
  0x31   :  { %854 = vmatprep.subr.bf16.mxu1 %v2662_v32  ;;  %v2668_v36 = vld [vmem:[%s3728_s1 + $0x14] ss:$8 sps:$4 sm:$0xff]   ;;  %v2616_v37 = vld [vmem:[%s3728_s1 + $0x1f0] ss:$8 sps:$4 sm:$0xff]   ;;  %v70_v39 = vld [vmem:[%s3727_s0 + $0x48] sm:$0xff] }
  0x32   :  { %855 = vmatpush1.bf16.msra.mxu1 %v2667_v33  ;;  %v63_v38 = vld [vmem:[%s3727_s0 + $0x10] sm:$0xff]  ;;  %v2619_v40 = vld [vmem:[%s3728_s1 + $0x204] ss:$8 sps:$4 sm:$0xff]   ;;  %v2676_v45 = vld [vmem:[%s3728_s1 + $0x20] ss:$8 sps:$4 sm:$0xff]  }
  0x33   :  { %974 = vmatpush1.bf16.msra.mxu0 %v2580_v7  ;;  %856 = vmatprep.subr.bf16.mxu1 %v2668_v36  ;;  %v2673_v41 = vld [vmem:[%s3728_s1 + $0x10] ss:$8 sps:$4 sm:$0xff]   ;;  %v78_v42 = vld [vmem:[%s3727_s0 + $0x88] sm:$0xff]  ;;  %v85_v44 = vld [vmem:[%s3727_s0 + $0xc0] sm:$0xff]  ;;  %v175_v47 = vpack.c.bf16 %v70_v39, %v63_v38 }
  0x34   :  { %975 = vmatprep.subr.bf16.mxu0 %v2581_v8  ;;  %v2674_v43 = vld [vmem:[%s3728_s1 + $0x24] ss:$8 sps:$4 sm:$0xff]   ;;  %v2677_v46 = vld [vmem:[%s3728_s1 + $0x34] ss:$8 sps:$4 sm:$0xff]   ;;  %v2617_v48 = vld [vmem:[%s3728_s1 + $0x200] ss:$8 sps:$4 sm:$0xff]   ;;  %v183_v49 = vpack.c.bf16 %v85_v44, %v78_v42 }
  0x35   :  { %v2622_v50 = vld [vmem:[%s3728_s1 + $0x214] ss:$8 sps:$4 sm:$0xff]   ;;  %v2679_v51 = vld [vmem:[%s3728_s1 + $0x30] ss:$8 sps:$4 sm:$0xff]   ;;  %v2680_v53 = vld [vmem:[%s3728_s1 + $0x44] ss:$8 sps:$4 sm:$0xff]  }
  0x36   :  { %857 = vmatpush1.bf16.msra.mxu1 %v2673_v41  ;;  %v2620_v52 = vld [vmem:[%s3728_s1 + $0x210] ss:$8 sps:$4 sm:$0xff]   ;;  %v77_v54 = vld [vmem:[%s3727_s0 + $0x80] sm:$0xff]  ;;  %v2683_v60 = vld [vmem:[%s3728_s1 + $0x54] ss:$8 sps:$4 sm:$0xff]  }
  0x37   :  { %976 = vmatpush1.bf16.msra.mxu0 %v2583_v9  ;;  %858 = vmatprep.subr.bf16.mxu1 %v2674_v43  ;;  %v84_v55 = vld [vmem:[%s3727_s0 + $0xb8] sm:$0xff]  ;;  %v2625_v56 = vld [vmem:[%s3728_s1 + $0x224] ss:$8 sps:$4 sm:$0xff]   ;;  %v99_v58 = vld [vmem:[%s3727_s0 + $0x130] sm:$0xff] }
  0x38   :  { %977 = vmatprep.subr.bf16.mxu0 %v2584_v10  ;;  %v92_v57 = vld [vmem:[%s3727_s0 + $0xf8] sm:$0xff]  ;;  %v2682_v59 = vld [vmem:[%s3728_s1 + $0x40] ss:$8 sps:$4 sm:$0xff]   ;;  %v182_v61 = vpack.c.bf16 %v84_v55, %v77_v54  ;;  %v2686_v3 = vld [vmem:[%s3728_s1 + $0x64] ss:$8 sps:$4 sm:$0xff]  }
  0x39   :  { %v2623_v62 = vld [vmem:[%s3728_s1 + $0x220] ss:$8 sps:$4 sm:$0xff]   ;;  %v190_v63 = vpack.c.bf16 %v99_v58, %v92_v57  ;;  %v2628_v0 = vld [vmem:[%s3728_s1 + $0x234] ss:$8 sps:$4 sm:$0xff]   ;;  %v2685_v1 = vld [vmem:[%s3728_s1 + $0x50] ss:$8 sps:$4 sm:$0xff]  }
  0x3a   :  { %859 = vmatpush1.bf16.msra.mxu1 %v2676_v45  ;;  %v2626_v2 = vld [vmem:[%s3728_s1 + $0x230] ss:$8 sps:$4 sm:$0xff]   ;;  %v98_v5 = vld [vmem:[%s3727_s0 + $0x128] sm:$0xff]  ;;  %v113_v8 = vld [vmem:[%s3727_s0 + $0x1a0] sm:$0xff] }
  0x3b   :  { %978 = vmatpush1.bf16.msra.mxu0 %v2586_v11  ;;  %860 = vmatprep.subr.bf16.mxu1 %v2677_v46  ;;  %v91_v4 = vld [vmem:[%s3727_s0 + $0xf0] sm:$0xff]  ;;  %v2631_v6 = vld [vmem:[%s3728_s1 + $0x244] ss:$8 sps:$4 sm:$0xff]   ;;  %v2688_v9 = vld [vmem:[%s3728_s1 + $0x60] ss:$8 sps:$4 sm:$0xff]  }
  0x3c   :  { %979 = vmatprep.subr.bf16.mxu0 %v2587_v12  ;;  %v106_v7 = vld [vmem:[%s3727_s0 + $0x168] sm:$0xff]  ;;  %v2689_v10 = vld [vmem:[%s3728_s1 + $0x74] ss:$8 sps:$4 sm:$0xff]   ;;  %v189_v11 = vpack.c.bf16 %v98_v5, %v91_v4  ;;  %v2691_v15 = vld [vmem:[%s3728_s1 + $0x70] ss:$8 sps:$4 sm:$0xff]  }
  0x3d   :  { %v2629_v12 = vld [vmem:[%s3728_s1 + $0x240] ss:$8 sps:$4 sm:$0xff]   ;;  %v197_v13 = vpack.c.bf16 %v113_v8, %v106_v7  ;;  %v2634_v14 = vld [vmem:[%s3728_s1 + $0x254] ss:$8 sps:$4 sm:$0xff]   ;;  %v2698_v33 = vld [vmem:[%s3728_s1 + $0xa4] ss:$8 sps:$4 sm:$0xff]  }
  0x3e   :  { %861 = vmatpush1.bf16.msra.mxu1 %v2679_v51  ;;  %v126_v36 = vld [vmem:[%s3727_s0 + $0x208] sm:$0xff]  ;;  %v141_v39 = vld [vmem:[%s3727_s0 + $0x280] sm:$0xff]  ;;  %v2701_v41 = vld [vmem:[%s3728_s1 + $0xb4] ss:$8 sps:$4 sm:$0xff]  }
  0x3f   :  { %980 = vmatpush1.bf16.msra.mxu0 %v2589_v16  ;;  %862 = vmatprep.subr.bf16.mxu1 %v2680_v53  ;;  %v2632_v16 = vld [vmem:[%s3728_s1 + $0x250] ss:$8 sps:$4 sm:$0xff]   ;;  %v134_v38 = vld [vmem:[%s3727_s0 + $0x248] sm:$0xff]  ;;  %v2646_v45 = vld [vmem:[%s3728_s1 + $0x294] ss:$8 sps:$4 sm:$0xff]  }
  0x40   :  { %981 = vmatprep.subr.bf16.mxu0 %v2590_v17  ;;  %v2692_v17 = vld [vmem:[%s3728_s1 + $0x84] ss:$8 sps:$4 sm:$0xff]   ;;  %v2641_v43 = vld [vmem:[%s3728_s1 + $0x280] ss:$8 sps:$4 sm:$0xff]   ;;  %v211_v44 = vpack.c.bf16 %v141_v39, %v134_v38  ;;  %v2703_v46 = vld [vmem:[%s3728_s1 + $0xb0] ss:$8 sps:$4 sm:$0xff]  }
  0x41   :  { %v2649_v51 = vld [vmem:[%s3728_s1 + $0x2a4] ss:$8 sps:$4 sm:$0xff]   ;;  %v155_v53 = vld [vmem:[%s3727_s0 + $0x2f0] sm:$0xff]  ;;  %v2706_v54 = vld [vmem:[%s3728_s1 + $0xc0] ss:$8 sps:$4 sm:$0xff]  }
  0x42   :  { %863 = vmatpush1.bf16.msra.mxu1 %v2682_v59  ;;  %v2707_v55 = vld [vmem:[%s3728_s1 + $0xd4] ss:$8 sps:$4 sm:$0xff]   ;;  %v2709_v59 = vld [vmem:[%s3728_s1 + $0xd0] ss:$8 sps:$4 sm:$0xff]   ;;  %v2712_v4 = vld [vmem:[%s3728_s1 + $0xe0] ss:$8 sps:$4 sm:$0xff]  }
  0x43   :  { %982 = vmatpush1.bf16.msra.mxu0 %v2592_v18  ;;  %864 = vmatprep.subr.bf16.mxu1 %v2683_v60  ;;  %v105_v18 = vld [vmem:[%s3727_s0 + $0x160] sm:$0xff]  ;;  %v2652_v58 = vld [vmem:[%s3728_s1 + $0x2b4] ss:$8 sps:$4 sm:$0xff]  }
  0x44   :  { %983 = vmatprep.subr.bf16.mxu0 %v2593_v19  ;;  %v112_v19 = vld [vmem:[%s3727_s0 + $0x198] sm:$0xff]  ;;  %v2672_v38 = vld [vmem:[%s3728_s1 + $0x304] ss:$8 sps:$4 sm:$0xff]  }
  0x45   :  { %v2713_v5 = vld [vmem:[%s3728_s1 + $0xf4] ss:$8 sps:$4 sm:$0xff]  }
  0x46   :  { %865 = vmatpush1.bf16.msra.mxu1 %v2685_v1  ;;  %v2655_v1 = vld [vmem:[%s3728_s1 + $0x2c4] ss:$8 sps:$4 sm:$0xff]   ;;  %v2658_v8 = vld [vmem:[%s3728_s1 + $0x2d4] ss:$8 sps:$4 sm:$0xff]  }
  0x47   :  { %984 = vmatpush1.bf16.msra.mxu0 %v2595_v20  ;;  %866 = vmatprep.subr.bf16.mxu1 %v2686_v3  ;;  %v2637_v20 = vld [vmem:[%s3728_s1 + $0x264] ss:$8 sps:$4 sm:$0xff]   ;;  %v80_v39 = vld [vmem:[%s3727_s0 + $0x98] sm:$0xff] }
  0x48   :  { %985 = vmatprep.subr.bf16.mxu0 %v2596_v21  ;;  %v120_v21 = vld [vmem:[%s3727_s0 + $0x1d8] sm:$0xff]  ;;  %v169_v3 = vld [vmem:[%s3727_s0 + $0x360] sm:$0xff] }
  0x4a   :  { %867 = vmatpush1.bf16.msra.mxu1 %v2688_v9  ;;  %v2715_v9 = vld [vmem:[%s3728_s1 + $0xf0] ss:$8 sps:$4 sm:$0xff]  }
  0x4b   :  { %986 = vmatpush1.bf16.msra.mxu0 %v2598_v22  ;;  %868 = vmatprep.subr.bf16.mxu1 %v2689_v10  ;;  %v127_v22 = vld [vmem:[%s3727_s0 + $0x210] sm:$0xff]  ;;  %v61_v10 = vld [vmem:[%s3727_s0] sm:$0xff] }
  0x4c   :  { %987 = vmatprep.subr.bf16.mxu0 %v2599_v23  ;;  %v2694_v23 = vld [vmem:[%s3728_s1 + $0x80] ss:$8 sps:$4 sm:$0xff]  }
  0x4e   :  { %869 = vmatpush1.bf16.msra.mxu1 %v2691_v15  ;;  %v76_v15 = vld [vmem:[%s3727_s0 + $0x78] sm:$0xff] }
  0x4f   :  { %988 = vmatpush1.bf16.msra.mxu0 %v2601_v24  ;;  %870 = vmatprep.subr.bf16.mxu1 %v2692_v17  ;;  %v2695_v24 = vld [vmem:[%s3728_s1 + $0x94] ss:$8 sps:$4 sm:$0xff]  }
  0x50   :  { %989 = vmatprep.subr.bf16.mxu0 %v2602_v25  ;;  %v196_v25 = vpack.c.bf16 %v112_v19, %v105_v18  ;;  %v168_v17 = vld [vmem:[%s3727_s0 + $0x358] sm:$0xff]  ;;  %v2661_v18 = vld [vmem:[%s3728_s1 + $0x2e4] ss:$8 sps:$4 sm:$0xff]  }
  0x51   :  { %v66_v19 = vld [vmem:[%s3727_s0 + $0x28] sm:$0xff] }
  0x52   :  { %871 = vmatpush1.bf16.msra.mxu1 %v2694_v23  ;;  %v2659_v23 = vld [vmem:[%s3728_s1 + $0x2e0] ss:$8 sps:$4 sm:$0xff]  }
  0x53   :  { %990 = vmatpush1.bf16.msra.mxu0 %v2604_v26  ;;  %v62_v26 = vld [vmem:[%s3727_s0 + $0x8] sm:$0xff]  ;;  %872 = vmatprep.subr.bf16.mxu1 %v2695_v24 }
  0x54   :  { %991 = vmatprep.subr.bf16.mxu0 %v2605_v27  ;;  %v2635_v27 = vld [vmem:[%s3728_s1 + $0x260] ss:$8 sps:$4 sm:$0xff]  }
  0x57   :  { %992 = vmatpush1.bf16.msra.mxu0 %v2607_v28  ;;  %v204_v28 = vpack.c.bf16 %v127_v22, %v120_v21 }
  0x58   :  { %993 = vmatprep.subr.bf16.mxu0 %v2608_v29  ;;  %v69_v29 = vld [vmem:[%s3727_s0 + $0x40] sm:$0xff] }
  0x59   :  { %v174_v32 = vpack.c.bf16 %v69_v29, %v62_v26  ;;  %v75_v26 = vld [vmem:[%s3727_s0 + $0x70] sm:$0xff]  ;;  %v90_v29 = vld [vmem:[%s3727_s0 + $0xe8] sm:$0xff] }
  0x5b   :  { %994 = vmatpush1.bf16.msra.mxu0 %v2610_v30  ;;  %v2640_v30 = vld [vmem:[%s3728_s1 + $0x274] ss:$8 sps:$4 sm:$0xff]   ;;  %886 = vmatprep.mubr.bf16.mxu1 %v174_v32  ;;  %v2717_v32 = vld [vmem:[%s3730_s3] sm:$0xff]  }
  0x5c   :  { %995 = vmatprep.subr.bf16.mxu0 %v2611_v31  ;;  %v2697_v31 = vld [vmem:[%s3728_s1 + $0x90] ss:$8 sps:$4 sm:$0xff]  }
  0x5d   :  { %873 = vmatpush1.bf16.msra.mxu1 %v2697_v31  ;;  %v2716_v31 = vld [vmem:[%s3730_s3 + $0x40] sm:$0xff]  }
  0x5e   :  { %874 = vmatprep.subr.bf16.mxu1 %v2698_v33  ;;  %v2718_v33 = vld [vmem:[%s3730_s3 + $0x48] sm:$0xff]  }
  0x5f   :  { %996 = vmatpush1.bf16.msra.mxu0 %v2613_v34  ;;  %v2638_v34 = vld [vmem:[%s3728_s1 + $0x270] ss:$8 sps:$4 sm:$0xff]  }
  0x60   :  { %997 = vmatprep.subr.bf16.mxu0 %v2614_v35  ;;  %v119_v35 = vld [vmem:[%s3727_s0 + $0x1d0] sm:$0xff] }
  0x61   :  { %v203_v42 = vpack.c.bf16 %v126_v36, %v119_v35  ;;  %v65_v35 = vld [vmem:[%s3727_s0 + $0x20] sm:$0xff]  ;;  %v72_v36 = vld [vmem:[%s3727_s0 + $0x58] sm:$0xff] }
  0x63   :  { %998 = vmatpush1.bf16.msra.mxu0 %v2616_v37  ;;  %v2643_v37 = vld [vmem:[%s3728_s1 + $0x284] ss:$8 sps:$4 sm:$0xff]  }
  0x64   :  { %1080 = vmatprep.subr.bf16.mxu0 %v2619_v40  ;;  %v2700_v40 = vld [vmem:[%s3728_s1 + $0xa0] ss:$8 sps:$4 sm:$0xff]  }
  0x65   :  { %875 = vmatpush1.bf16.msra.mxu1 %v2700_v40  ;;  %v87_v40 = vld [vmem:[%s3727_s0 + $0xd0] sm:$0xff] }
  0x66   :  { %1000 = vmatmul.mubr.bf16.vlgmr.msra.gmra.mrb[0].mxu0 %v175_v47  ;;  %v2644_v47 = vld [vmem:[%s3728_s1 + $0x290] ss:$8 sps:$4 sm:$0xff]   ;;  %876 = vmatprep.subr.bf16.mxu1 %v2701_v41 }
  0x67   :  { %1081 = vmatpush1.bf16.msra.mxu0 %v2617_v48  ;;  %1009 = vmatprep.mubr.bf16.mxu0 %v183_v49  ;;  %v133_v48 = vld [vmem:[%s3727_s0 + $0x240] sm:$0xff]  ;;  %v140_v49 = vld [vmem:[%s3727_s0 + $0x278] sm:$0xff] }
  0x68   :  { %1082 = vmatprep.subr.bf16.mxu0 %v2622_v50  ;;  %v2704_v50 = vld [vmem:[%s3728_s1 + $0xc4] ss:$8 sps:$4 sm:$0xff]   ;;  %v210_v57 = vpack.c.bf16 %v140_v49, %v133_v48  ;;  %v96_v48 = vld [vmem:[%s3727_s0 + $0x118] sm:$0xff] }
  0x69   :  { %877 = vmatpush1.bf16.msra.mxu1 %v2703_v46  ;;  %v2720_v46 = vld [vmem:[%s3730_s3 + $0x50] sm:$0xff]   ;;  %v104_v49 = vld [vmem:[%s3727_s0 + $0x158] sm:$0xff] }
  0x6a   :  { %878 = vmatprep.subr.bf16.mxu1 %v2704_v50  ;;  %v111_v50 = vld [vmem:[%s3727_s0 + $0x190] sm:$0xff] }
  0x6b   :  { %1083 = vmatpush1.bf16.msra.mxu0 %v2620_v52  ;;  %v148_v52 = vld [vmem:[%s3727_s0 + $0x2b8] sm:$0xff] }
  0x6c   :  { %1084 = vmatprep.subr.bf16.mxu0 %v2625_v56  ;;  %v2647_v56 = vld [vmem:[%s3728_s1 + $0x2a0] ss:$8 sps:$4 sm:$0xff]   ;;  %v218_v60 = vpack.c.bf16 %v155_v53, %v148_v52  ;;  %v2722_v52 = vld [vmem:[%s3730_s3 + $0x58] sm:$0xff]   ;;  %v79_v53 = vld [vmem:[%s3727_s0 + $0x90] sm:$0xff] }
  0x6d   :  { %879 = vmatpush1.bf16.msra.mxu1 %v2706_v54  ;;  %v86_v54 = vld [vmem:[%s3727_s0 + $0xc8] sm:$0xff] }
  0x6e   :  { %1010 = vmatmul.mubr.bf16.gmra.mrb[4].mxu0 %v182_v61  ;;  %v2650_v61 = vld [vmem:[%s3728_s1 + $0x2b0] ss:$8 sps:$4 sm:$0xff]   ;;  %880 = vmatprep.subr.bf16.mxu1 %v2707_v55 }
  0x6f   :  { %1085 = vmatpush1.bf16.msra.mxu0 %v2623_v62  ;;  %1019 = vmatprep.mubr.bf16.mxu0 %v190_v63  ;;  %v147_v62 = vld [vmem:[%s3727_s0 + $0x2b0] sm:$0xff]  ;;  %v154_v63 = vld [vmem:[%s3727_s0 + $0x2e8] sm:$0xff] }
  0x70   :  { %1086 = vmatprep.subr.bf16.mxu0 %v2628_v0  ;;  %v2710_v0 = vld [vmem:[%s3728_s1 + $0xe4] ss:$8 sps:$4 sm:$0xff]   ;;  %v217_v7 = vpack.c.bf16 %v154_v63, %v147_v62  ;;  %v103_v63 = vld [vmem:[%s3727_s0 + $0x150] sm:$0xff] }
  0x71   :  { %881 = vmatpush1.bf16.msra.mxu1 %v2709_v59  ;;  %v2723_v59 = vld [vmem:[%s3730_s3 + $0x18] sm:$0xff]  }
  0x72   :  { %882 = vmatprep.subr.bf16.mxu1 %v2710_v0  ;;  %v110_v0 = vld [vmem:[%s3727_s0 + $0x188] sm:$0xff] }
  0x73   :  { %1087 = vmatpush1.bf16.msra.mxu0 %v2626_v2  ;;  %v162_v2 = vld [vmem:[%s3727_s0 + $0x328] sm:$0xff] }
  0x74   :  { %1088 = vmatprep.subr.bf16.mxu0 %v2631_v6  ;;  %v2653_v6 = vld [vmem:[%s3728_s1 + $0x2c0] ss:$8 sps:$4 sm:$0xff]  }
  0x75   :  { %883 = vmatpush1.bf16.msra.mxu1 %v2712_v4  ;;  %v2726_v4 = vld [vmem:[%s3730_s3 + $0x68] sm:$0xff]  }
  0x76   :  { %1020 = vmatmul.mubr.bf16.gmra.mrb[8].mxu0 %v189_v11  ;;  %v68_v11 = vld [vmem:[%s3727_s0 + $0x38] sm:$0xff]  ;;  %884 = vmatprep.subr.bf16.mxu1 %v2713_v5  ;;  %v93_v5 = vld [vmem:[%s3727_s0 + $0x100] sm:$0xff] }
  0x77   :  { %1089 = vmatpush1.bf16.msra.mxu0 %v2629_v12  ;;  %1029 = vmatprep.mubr.bf16.mxu0 %v197_v13  ;;  %v225_v12 = vpack.c.bf16 %v169_v3, %v162_v2  ;;  %v2656_v13 = vld [vmem:[%s3728_s1 + $0x2d0] ss:$8 sps:$4 sm:$0xff]   ;;  %v173_v21 = vpack.c.bf16 %v68_v11, %v61_v10  ;;  %v125_v2 = vld [vmem:[%s3727_s0 + $0x200] sm:$0xff]  ;;  %v2727_v11 = vld [vmem:[%s3730_s3 + $0x28] sm:$0xff]  }
  0x78   :  { %1090 = vmatprep.subr.bf16.mxu0 %v2634_v14  ;;  %v161_v14 = vld [vmem:[%s3727_s0 + $0x320] sm:$0xff] }
  0x79   :  { %885 = vmatpush1.bf16.msra.mxu1 %v2715_v9  ;;  %v224_v24 = vpack.c.bf16 %v168_v17, %v161_v14  ;;  %v2725_v3 = vld [vmem:[%s3730_s3 + $0x20] sm:$0xff]   ;;  %v115_v9 = vld [vmem:[%s3727_s0 + $0x1b0] sm:$0xff]  ;;  %v132_v17 = vld [vmem:[%s3727_s0 + $0x238] sm:$0xff] }
  0x7a   :  { %2276 = vmatprep.subr.bf16.mxu1 %v2716_v31  ;;  %v121_v31 = vld [vmem:[%s3727_s0 + $0x1e0] sm:$0xff] }
  0x7b   :  { %1091 = vmatpush1.bf16.msra.mxu0 %v2632_v16  ;;  %v83_v16 = vld [vmem:[%s3727_s0 + $0xb0] sm:$0xff] }
  0x7c   :  { %1092 = vmatprep.subr.bf16.mxu0 %v2637_v20  ;;  %v73_v20 = vld [vmem:[%s3727_s0 + $0x60] sm:$0xff]  ;;  %v181_v22 = vpack.c.bf16 %v83_v16, %v76_v15  ;;  %887 = vmatmul.mubr.bf16.vlgmr.msra.gmra.mrb[0].mxu1 %v173_v21  ;;  %v124_v16 = vld [vmem:[%s3727_s0 + $0x1f8] sm:$0xff] }
  0x7d   :  { %2277 = vmatpush3.bf16.msra.mxu1 %v2717_v32  ;;  %v117_v15 = vld [vmem:[%s3727_s0 + $0x1c0] sm:$0xff]  ;;  %v128_v32 = vld [vmem:[%s3727_s0 + $0x218] sm:$0xff] }
  0x7e   :  { %1030 = vmatmul.mubr.bf16.gmra.mrb[12].mxu0 %v196_v25  ;;  %v2666_v25 = vld [vmem:[%s3728_s1 + $0x2f4] ss:$8 sps:$4 sm:$0xff]   ;;  %896 = vmatprep.mubr.bf16.mxu1 %v181_v22  ;;  %v201_v21 = vpack.c.bf16 %v124_v16, %v117_v15  ;;  %v122_v22 = vld [vmem:[%s3727_s0 + $0x1e8] sm:$0xff]  ;;  %v137_v16 = vld [vmem:[%s3727_s0 + $0x260] sm:$0xff] }
  0x7f   :  { %1093 = vmatpush1.bf16.msra.mxu0 %v2635_v27  ;;  %1039 = vmatprep.mubr.bf16.mxu0 %v204_v28  ;;  %v82_v27 = vld [vmem:[%s3727_s0 + $0xa8] sm:$0xff]  ;;  %v178_v28 = vpack.c.bf16 %v73_v20, %v66_v19  ;;  %v107_v19 = vld [vmem:[%s3727_s0 + $0x170] sm:$0xff] }
  0x80   :  { %1094 = vmatprep.subr.bf16.mxu0 %v2640_v30  ;;  %v97_v30 = vld [vmem:[%s3727_s0 + $0x120] sm:$0xff]  ;;  %2278 = vmatprep.subr.bf16.mxu1 %v2718_v33  ;;  %v114_v20 = vld [vmem:[%s3727_s0 + $0x1a8] sm:$0xff] }
  0x81   :  { %v188_v41 = vpack.c.bf16 %v97_v30, %v90_v29  ;;  %v146_v29 = vld [vmem:[%s3727_s0 + $0x2a8] sm:$0xff]  ;;  %v153_v30 = vld [vmem:[%s3727_s0 + $0x2e0] sm:$0xff] }
  0x83   :  { %1095 = vmatpush1.bf16.msra.mxu0 %v2638_v34  ;;  %v2664_v34 = vld [vmem:[%s3728_s1 + $0x2f0] ss:$8 sps:$4 sm:$0xff]  }
  0x84   :  { %1096 = vmatprep.subr.bf16.mxu0 %v2643_v37  ;;  %v180_v37 = vpack.c.bf16 %v82_v27, %v75_v26  ;;  %v131_v27 = vld [vmem:[%s3727_s0 + $0x230] sm:$0xff] }
  0x86   :  { %1040 = vmatmul.mubr.bf16.gmra.mrb[16].mxu0 %v203_v42  ;;  %v2670_v42 = vld [vmem:[%s3728_s1 + $0x300] ss:$8 sps:$4 sm:$0xff]   ;;  %897 = vmatmul.mubr.bf16.gmra.mrb[4].mxu1 %v180_v37  ;;  %v205_v37 = vpack.c.bf16 %v128_v32, %v121_v31 }
  0x87   :  { %1097 = vmatpush1.bf16.msra.mxu0 %v2641_v43  ;;  %1049 = vmatprep.mubr.bf16.mxu0 %v211_v44  ;;  %v2719_v43 = vld [vmem:[%s3730_s3 + $0x8] sm:$0xff]   ;;  %v177_v44 = vpack.c.bf16 %v72_v36, %v65_v35  ;;  %v143_v35 = vld [vmem:[%s3727_s0 + $0x290] sm:$0xff]  ;;  %v216_v36 = vpack.c.bf16 %v153_v30, %v146_v29 }
  0x88   :  { %1098 = vmatprep.subr.bf16.mxu0 %v2646_v45  ;;  %v89_v45 = vld [vmem:[%s3727_s0 + $0xe0] sm:$0xff]  ;;  %906 = vmatprep.mubr.bf16.mxu1 %v188_v41  ;;  %v160_v41 = vld [vmem:[%s3727_s0 + $0x318] sm:$0xff] }
  0x89   :  { %2279 = vmatpush3.bf16.msra.mxu1 %v2719_v43  ;;  %v187_v55 = vpack.c.bf16 %v96_v48, %v89_v45  ;;  %v135_v43 = vld [vmem:[%s3727_s0 + $0x250] sm:$0xff] }
  0x8a   :  { %2280 = vmatprep.subr.bf16.mxu1 %v2720_v46  ;;  %v150_v46 = vld [vmem:[%s3727_s0 + $0x2c8] sm:$0xff] }
  0x8b   :  { %1099 = vmatpush1.bf16.msra.mxu0 %v2644_v47  ;;  %v185_v47 = vpack.c.bf16 %v87_v40, %v80_v39  ;;  %v145_v39 = vld [vmem:[%s3727_s0 + $0x2a0] sm:$0xff]  ;;  %v152_v40 = vld [vmem:[%s3727_s0 + $0x2d8] sm:$0xff] }
  0x8c   :  { %1100 = vmatprep.subr.bf16.mxu0 %v2649_v51  ;;  %v2721_v51 = vld [vmem:[%s3730_s3 + $0x10] sm:$0xff]   ;;  %v215_v45 = vpack.c.bf16 %v152_v40, %v145_v39 }
  0x8d   :  { %2281 = vmatpush3.bf16.msra.mxu1 %v2721_v51  ;;  %v159_v51 = vld [vmem:[%s3727_s0 + $0x310] sm:$0xff] }
  0x8e   :  { %1050 = vmatmul.mubr.bf16.gmra.mrb[20].mxu0 %v210_v57  ;;  %v101_v57 = vld [vmem:[%s3727_s0 + $0x140] sm:$0xff]  ;;  %2282 = vmatprep.subr.bf16.mxu1 %v2722_v52  ;;  %v166_v52 = vld [vmem:[%s3727_s0 + $0x348] sm:$0xff] }
  0x8f   :  { %1101 = vmatpush1.bf16.msra.mxu0 %v2647_v56  ;;  %1059 = vmatprep.mubr.bf16.mxu0 %v218_v60  ;;  %v94_v56 = vld [vmem:[%s3727_s0 + $0x108] sm:$0xff]  ;;  %v184_v60 = vpack.c.bf16 %v86_v54, %v79_v53  ;;  %v149_v53 = vld [vmem:[%s3727_s0 + $0x2c0] sm:$0xff]  ;;  %v156_v54 = vld [vmem:[%s3727_s0 + $0x2f8] sm:$0xff] }
  0x90   :  { %1102 = vmatprep.subr.bf16.mxu0 %v2652_v58  ;;  %v195_v58 = vpack.c.bf16 %v111_v50, %v104_v49  ;;  %v192_v62 = vpack.c.bf16 %v101_v57, %v94_v56  ;;  %907 = vmatmul.mubr.bf16.gmra.mrb[8].mxu1 %v187_v55  ;;  %v222_v55 = vpack.c.bf16 %v166_v52, %v159_v51  ;;  %v164_v56 = vld [vmem:[%s3727_s0 + $0x338] sm:$0xff]  ;;  %v171_v57 = vld [vmem:[%s3727_s0 + $0x370] sm:$0xff] }
  0x91   :  { %2283 = vmatpush3.bf16.msra.mxu1 %v2723_v59  ;;  %v227_v59 = vpack.c.bf16 %v171_v57, %v164_v56  ;;  %v329_v56 = vlaneseq }
  0x92   :  { %916 = vmatprep.mubr.bf16.mxu1 %v195_v58  ;;  %v219_v58 = vpack.c.bf16 %v156_v54, %v149_v53 }
  0x93   :  { %1103 = vmatpush1.bf16.msra.mxu0 %v2650_v61  ;;  %v2724_v61 = vld [vmem:[%s3730_s3 + $0x60] sm:$0xff]  }
  0x94   :  { %1104 = vmatprep.subr.bf16.mxu0 %v2655_v1  ;;  %v118_v1 = vld [vmem:[%s3727_s0 + $0x1c8] sm:$0xff]  ;;  %2284 = vmatprep.subr.bf16.mxu1 %v2724_v61 }
  0x95   :  { %v202_v10 = vpack.c.bf16 %v125_v2, %v118_v1  ;;  %2285 = vmatpush3.bf16.msra.mxu1 %v2725_v3  ;;  %v170_v61 = vld [vmem:[%s3727_s0 + $0x368] sm:$0xff]  ;;  %v81_v3 = vld [vmem:[%s3727_s0 + $0xa0] sm:$0xff] }
  0x96   :  { %1060 = vmatmul.mubr.bf16.gmra.mrb[24].mxu0 %v217_v7  ;;  %v194_v7 = vpack.c.bf16 %v110_v0, %v103_v63  ;;  %2286 = vmatprep.subr.bf16.mxu1 %v2726_v4  ;;  %v2800_v63 = vmov 0   ;;  %v67_v0 = vld [vmem:[%s3727_s0 + $0x30] sm:$0xff]  ;;  %v74_v1 = vld [vmem:[%s3727_s0 + $0x68] sm:$0xff]  ;;  %v88_v4 = vld [vmem:[%s3727_s0 + $0xd8] sm:$0xff] }
  0x97   :  { %1105 = vmatpush1.bf16.msra.mxu0 %v2653_v6  ;;  %1069 = vmatprep.mubr.bf16.mxu0 %v225_v12  ;;  %v100_v6 = vld [vmem:[%s3727_s0 + $0x138] sm:$0xff]  ;;  %v179_v2 = vpack.c.bf16 %v74_v1, %v67_v0 }
  0x98   :  { %1106 = vmatprep.subr.bf16.mxu0 %v2658_v8  ;;  %v108_v8 = vld [vmem:[%s3727_s0 + $0x178] sm:$0xff]  ;;  %v191_v12 = vpack.c.bf16 %v100_v6, %v93_v5  ;;  %917 = vmatmul.mubr.bf16.gmra.mrb[12].mxu1 %v194_v7  ;;  %v186_v5 = vpack.c.bf16 %v88_v4, %v81_v3  ;;  %v95_v6 = vld [vmem:[%s3727_s0 + $0x110] sm:$0xff]  ;;  %v102_v7 = vld [vmem:[%s3727_s0 + $0x148] sm:$0xff] }
  0x99   :  { %v199_v14 = vpack.c.bf16 %v115_v9, %v108_v8  ;;  %926 = vmatprep.mubr.bf16.mxu1 %v202_v10  ;;  %2287 = vmatpush3.bf16.msra.mxu1 %v2727_v11  ;;  %v2729_v8 = vld [vmem:[%s3730_s3 + $0x30] sm:$0xff]   ;;  %v193_v9 = vpack.c.bf16 %v102_v7, %v95_v6  ;;  %v109_v10 = vld [vmem:[%s3727_s0 + $0x180] sm:$0xff]  ;;  %v116_v11 = vld [vmem:[%s3727_s0 + $0x1b8] sm:$0xff] }
  0x9b   :  { %1107 = vmatpush1.bf16.msra.mxu0 %v2656_v13  ;;  %v2728_v13 = vld [vmem:[%s3730_s3 + $0x70] sm:$0xff]  }
  0x9c   :  { %1108 = vmatprep.subr.bf16.mxu0 %v2661_v18  ;;  %v139_v18 = vld [vmem:[%s3727_s0 + $0x270] sm:$0xff]  ;;  %2288 = vmatprep.subr.bf16.mxu1 %v2728_v13 }
  0x9d   :  { %2289 = vmatpush3.bf16.msra.mxu1 %v2729_v8  ;;  %v123_v13 = vld [vmem:[%s3727_s0 + $0x1f0] sm:$0xff] }
  0x9e   :  { %1070 = vmatmul.mubr.bf16.gmra.mrb[28].mxu0 %v224_v24  ;;  %v209_v24 = vpack.c.bf16 %v139_v18, %v132_v17  ;;  %v144_v17 = vld [vmem:[%s3727_s0 + $0x298] sm:$0xff] }
  0x9f   :  { %1109 = vmatpush1.bf16.msra.mxu0 %v2659_v23  ;;  %1112 = vmatprep.mubr.bf16.mxu0 %v178_v28  ;;  %v129_v23 = vld [vmem:[%s3727_s0 + $0x220] sm:$0xff]  ;;  %v138_v28 = vld [vmem:[%s3727_s0 + $0x268] sm:$0xff]  ;;  %v214_v18 = vpack.c.bf16 %v144_v17, %v137_v16 }
  0xa0   :  { %1110 = vmatprep.subr.bf16.mxu0 %v2666_v25  ;;  %v198_v25 = vpack.c.bf16 %v114_v20, %v107_v19  ;;  %v206_v26 = vpack.c.bf16 %v129_v23, %v122_v22  ;;  %927 = vmatmul.mubr.bf16.gmra.mrb[16].mxu1 %v201_v21  ;;  %v208_v33 = vpack.c.bf16 %v138_v28, %v131_v27  ;;  %v151_v19 = vld [vmem:[%s3727_s0 + $0x2d0] sm:$0xff]  ;;  %v158_v20 = vld [vmem:[%s3727_s0 + $0x308] sm:$0xff]  ;;  %v165_v22 = vld [vmem:[%s3727_s0 + $0x340] sm:$0xff] }
  0xa1   :  { %936 = vmatprep.mubr.bf16.mxu1 %v209_v24  ;;  %v221_v21 = vpack.c.bf16 %v158_v20, %v151_v19  ;;  %v172_v23 = vld [vmem:[%s3727_s0 + $0x378] sm:$0xff] }
  0xa2   :  { %v228_v24 = vpack.c.bf16 %v172_v23, %v165_v22 }
  0xa3   :  { %1111 = vmatpush1.bf16.msra.mxu0 %v2664_v34  ;;  %v136_v34 = vld [vmem:[%s3727_s0 + $0x258] sm:$0xff] }
  0xa4   :  { %1193 = vmatprep.subr.bf16.mxu0 %v2672_v38  ;;  %v213_v38 = vpack.c.bf16 %v143_v35, %v136_v34  ;;  %v3561_v35 = vld [vmem:[#allocation2] sm:$0xff]  }
  0xa6   :  { %1113 = vmatmul.mubr.bf16.vlgmr.msra.gmra.mrb[0].mxu0 %v177_v44  ;;  %v142_v44 = vld [vmem:[%s3727_s0 + $0x288] sm:$0xff] }
  0xa7   :  { %1194 = vmatpush1.bf16.msra.mxu0 %v2670_v42  ;;  %1122 = vmatprep.mubr.bf16.mxu0 %v185_v47  ;;  %v167_v42 = vld [vmem:[%s3727_s0 + $0x350] sm:$0xff]  ;;  %v157_v47 = vld [vmem:[%s3727_s0 + $0x300] sm:$0xff]  ;;  %v212_v49 = vpack.c.bf16 %v142_v44, %v135_v43 }
  0xa8   :  { %937 = vmatmul.mubr.bf16.gmra.mrb[20].mxu1 %v208_v33  ;;  %v223_v48 = vpack.c.bf16 %v167_v42, %v160_v41  ;;  %v220_v50 = vpack.c.bf16 %v157_v47, %v150_v46 }
  0xa9   :  { %946 = vmatprep.mubr.bf16.mxu1 %v216_v36 }
  0xae   :  { %1123 = vmatmul.mubr.bf16.gmra.mrb[4].mxu0 %v184_v60  ;;  %v163_v60 = vld [vmem:[%s3727_s0 + $0x330] sm:$0xff] }
  0xaf   :  { %1132 = vmatprep.mubr.bf16.mxu0 %v192_v62  ;;  %v226_v62 = vpack.c.bf16 %v170_v61, %v163_v60  ;;  %v330_v61 = vshrl.u32 %v329_v56, 7 }
  0xb0   :  { %947 = vmatmul.mubr.bf16.gmra.mrb[24].mxu1 %v215_v45 }
  0xb1   :  { %956 = vmatprep.mubr.bf16.mxu1 %v223_v48  ;;  %v335_v0 = vsub.s32 1, %v330_v61 }
  0xb6   :  { %1133 = vmatmul.mubr.bf16.gmra.mrb[8].mxu0 %v191_v12  ;;  %v200_v12 = vpack.c.bf16 %v116_v11, %v109_v10 }
  0xb7   :  { %1142 = vmatprep.mubr.bf16.mxu0 %v199_v14  ;;  %v130_v14 = vld [vmem:[%s3727_s0 + $0x228] sm:$0xff] }
  0xb8   :  { %957 = vmatmul.mubr.bf16.gmra.mrb[28].mxu1 %v222_v55  ;;  %v207_v15 = vpack.c.bf16 %v130_v14, %v123_v13 }
  0xbe   :  { %1143 = vmatmul.mubr.bf16.gmra.mrb[12].mxu0 %v198_v25  ;;  %v2730_v25 = vld [vmem:[%s3730_s3 + $0x78] sm:$0xff]  }
  0xbf   :  { %1152 = vmatprep.mubr.bf16.mxu0 %v206_v26  ;;  %v2731_v26 = vld [vmem:[%s3730_s3 + $0x38] sm:$0xff]   ;;  %2290 = vmatprep.subr.bf16.mxu1 %v2730_v25 }
  0xc0   :  { %2291 = vmatpush3.bf16.msra.mxu1 %v2731_v26 }
  0xc1   :  { %2372 = vmatprep.subr.bf16.mxu1 %v3561_v35 }
  0xc6   :  { %1153 = vmatmul.mubr.bf16.gmra.mrb[16].mxu0 %v205_v37 }
  0xc7   :  { %1162 = vmatprep.mubr.bf16.mxu0 %v213_v38 }
  0xce   :  { %1163 = vmatmul.mubr.bf16.gmra.mrb[20].mxu0 %v212_v49 }
  0xcf   :  { %1172 = vmatprep.mubr.bf16.mxu0 %v220_v50 }
  0xd6   :  { %1173 = vmatmul.mubr.bf16.gmra.mrb[24].mxu0 %v219_v58 }
  0xd7   :  { %1182 = vmatprep.mubr.bf16.mxu0 %v227_v59 }
  0xde   :  { %1183 = vmatmul.mubr.bf16.gmra.mrb[28].mxu0 %v226_v62  ;;  %v331_v62 = vsub.s32 0, %v330_v61 }
  0xdf   :  { %1225 = vmatprep.mubr.bf16.mxu0 %v2800_v63 }
  0xe6   :  { %2154 = vmatmul.mubr.msk.bf16.vlgmr.msra.gmra.mrb[0].mxu0 %vm829_vm0, %v179_v2 }
  0xe7   :  { %1235 = vmatprep.mubr.bf16.mxu0 %v2800_v63 }
  0xee   :  { %2155 = vmatmul.mubr.msk.bf16.gmra.mrb[4].mxu0 %vm829_vm0, %v186_v5 }
  0xef   :  { %1245 = vmatprep.mubr.bf16.mxu0 %v2800_v63 }
  0xf6   :  { %2156 = vmatmul.mubr.msk.bf16.gmra.mrb[8].mxu0 %vm829_vm0, %v193_v9 }
  0xf7   :  { %1255 = vmatprep.mubr.bf16.mxu0 %v2800_v63 }
  0xfe   :  { %2157 = vmatmul.mubr.msk.bf16.gmra.mrb[12].mxu0 %vm829_vm0, %v200_v12 }
  0xff   :  { %1265 = vmatprep.mubr.bf16.mxu0 %v2800_v63 }
 0x106   :  { %2158 = vmatmul.mubr.msk.bf16.gmra.mrb[16].mxu0 %vm829_vm0, %v207_v15 }
 0x107   :  { %1275 = vmatprep.mubr.bf16.mxu0 %v2800_v63 }
 0x10e   :  { %2159 = vmatmul.mubr.msk.bf16.gmra.mrb[20].mxu0 %vm829_vm0, %v214_v18 }
 0x10f   :  { %1285 = vmatprep.mubr.bf16.mxu0 %v2800_v63 }
 0x116   :  { %2160 = vmatmul.mubr.msk.bf16.gmra.mrb[24].mxu0 %vm829_vm0, %v221_v21 }
 0x117   :  { %1295 = vmatprep.mubr.bf16.mxu0 %v2800_v63  ;;  %v327_v63 = vld [vmem:[%s3729_s2] sm:$0x3] }
 0x118   :  { %v3615_v1 = vrot.slane %v327_v63, %v331_v62  ;;  %v3617_v2 = vrot.slane %v327_v63, %v335_v0 }
 0x11e   :  { %2161 = vmatmul.mubr.msk.bf16.gmra.mrb[28].mxu0 %vm829_vm0, %v228_v24 }
 0x14f   :  { %v888_v27 = vpop.f32.mrb[0].mxu1 }
 0x150   :  { %v890_v28 = vpop.f32.mrb[1].mxu1  ;;  %v889_v3 = vadd.f32 %v888_v27, %v3615_v1  ;;  %v2733_v27 = vld [vmem:[#allocation2 + $0x8] sm:$0xff]  }
 0x151   :  { %v892_v29 = vpop.f32.mrb[2].mxu1  ;;  %v891_v4 = vadd.f32 %v890_v28, %v3617_v2 }
 0x152   :  { %v894_v30 = vpop.f32.mrb[3].mxu1  ;;  %v893_v6 = vadd.f32 %v892_v29, %v3615_v1 }
 0x153   :  { %v895_v9 = vadd.f32 %v894_v30, %v3617_v2 }
 0x159   :  { %v898_v31 = vpop.f32.mrb[4].mxu1 }
 0x15a   :  { %v900_v32 = vpop.f32.mrb[5].mxu1  ;;  %v899_v17 = vadd.f32 %v898_v31, %v3615_v1 }
 0x15b   :  { %v902_v33 = vpop.f32.mrb[6].mxu1  ;;  %v901_v20 = vadd.f32 %v900_v32, %v3617_v2 }
 0x15c   :  { %v904_v34 = vpop.f32.mrb[7].mxu1  ;;  %v903_v24 = vadd.f32 %v902_v33, %v3615_v1  ;;  %v2734_v33 = vld [vmem:[#allocation2 + $0x10] sm:$0xff]  }
 0x15d   :  { %v905_v28 = vadd.f32 %v904_v34, %v3617_v2 }
 0x163   :  { %v3563_v36 = vpop.f32.mrb[8].mxu1 }
 0x164   :  { %v3566_v37 = vpop.f32.mrb[9].mxu1  ;;  %v909_v63 = vadd.f32 %v3563_v36, %v3615_v1 }
 0x165   :  { %v3568_v38 = vpop.f32.mrb[10].mxu1  ;;  %v911_v34 = vadd.f32 %v3566_v37, %v3617_v2 }
 0x166   :  { %v3570_v39 = vpop.f32.mrb[11].mxu1 }
 0x167   :  { %v915_v36 = vadd.f32 %v3570_v39, %v3617_v2 }
 0x16b   :  { %v3572_v40 = vpop.f32.mrb[12].mxu1 }
 0x16c   :  { %v3574_v41 = vpop.f32.mrb[13].mxu1 }
 0x16d   :  { %v3576_v42 = vpop.f32.mrb[14].mxu1 }
 0x16e   :  { %v3578_v43 = vpop.f32.mrb[15].mxu1 }
 0x173   :  { %v3580_v44 = vpop.f32.mrb[16].mxu1 }
 0x174   :  { %v3582_v45 = vpop.f32.mrb[17].mxu1 }
 0x175   :  { %v3584_v46 = vpop.f32.mrb[18].mxu1 }
 0x176   :  { %v3586_v47 = vpop.f32.mrb[19].mxu1 }
 0x17b   :  { %v3588_v48 = vpop.f32.mrb[20].mxu1 }
 0x17c   :  { %v3590_v49 = vpop.f32.mrb[21].mxu1 }
 0x17d   :  { %v3592_v50 = vpop.f32.mrb[22].mxu1 }
 0x17e   :  { %v3594_v51 = vpop.f32.mrb[23].mxu1 }
 0x183   :  { %v3596_v52 = vpop.f32.mrb[24].mxu1 }
 0x184   :  { %v3598_v53 = vpop.f32.mrb[25].mxu1 }
 0x185   :  { %v3600_v54 = vpop.f32.mrb[26].mxu1 }
 0x186   :  { %v3602_v55 = vpop.f32.mrb[27].mxu1 }
 0x18b   :  { %v3604_v57 = vpop.f32.mrb[28].mxu1 }
 0x18c   :  { %v3606_v58 = vpop.f32.mrb[29].mxu1 }
 0x18d   :  { %v3608_v59 = vpop.f32.mrb[30].mxu1 }
 0x18e   :  { %v3610_v60 = vpop.f32.mrb[31].mxu1 }
 0x1b9   :  { %v1227_v5 = vpop.f32.mrb[0].mxu0 }
 0x1ba   :  { %v2437_v7 = vadd.f32 %v1227_v5, %v889_v3  ;;  %v1229_v8 = vpop.f32.mrb[1].mxu0 }
 0x1bb   :  { %v2439_v10 = vadd.f32 %v1229_v8, %v891_v4  ;;  %v1231_v11 = vpop.f32.mrb[2].mxu0 }
 0x1bc   :  { %v2441_v12 = vadd.f32 %v1231_v11, %v893_v6  ;;  %v1233_v13 = vpop.f32.mrb[3].mxu0  ;;  %v1306_v15 = vmax.f32 %v2437_v7, 0.0  ;;  %v913_v7 = vadd.f32 %v3568_v38, %v3615_v1 }
 0x1bd   :  { %v2443_v14 = vadd.f32 %v1233_v13, %v895_v9  ;;  %v1307_v18 = vmax.f32 %v2439_v10, 0.0 }
 0x1be   :  { %v1308_v16 = vmax.f32 %v2441_v12, 0.0 }
 0x1bf   :  { %v1309_v19 = vmax.f32 %v2443_v14, 0.0 }
 0x1c0   :  { %v1338_v21 = vpack.c.bf16 %v1308_v16, %v1306_v15  ;;  %v919_v15 = vadd.f32 %v3572_v40, %v3615_v1 }
 0x1c1   :  { %v1339_v22 = vpack.c.bf16 %v1309_v19, %v1307_v18  ;;  %v1237_v23 = vpop.f32.mrb[4].mxu0 }
 0x1c2   :  { %v2445_v25 = vadd.f32 %v1237_v23, %v899_v17  ;;  %v1239_v26 = vpop.f32.mrb[5].mxu0  ;;  %v921_v17 = vadd.f32 %v3574_v41, %v3617_v2  ;;  %v925_v23 = vadd.f32 %v3578_v43, %v3617_v2 }
 0x1c3   :  { %v2447_v29 = vadd.f32 %v1239_v26, %v901_v20  ;;  %v1241_v30 = vpop.f32.mrb[6].mxu0  ;;  %1521 = vmatprep.mubr.bf16.mxu1 %v1339_v22  ;;  %v923_v20 = vadd.f32 %v3576_v42, %v3615_v1  ;;  %v931_v42 = vadd.f32 %v3582_v45, %v3617_v2 }
 0x1c4   :  { %v2449_v56 = vadd.f32 %v1241_v30, %v903_v24  ;;  %v1243_v61 = vpop.f32.mrb[7].mxu0  ;;  %1522 = vmatmul.mubr.bf16.vlgmr.msra.gmra.mrb[32].mxu1 %v1338_v21  ;;  %v1310_v32 = vmax.f32 %v2445_v25, 0.0 }
 0x1c5   :  { %v2451_v31 = vadd.f32 %v1243_v61, %v905_v28  ;;  %2373 = vmatpush3.bf16.msra.mxu1 %v3561_v35  ;;  %v1311_v0 = vmax.f32 %v2447_v29, 0.0  ;;  %v929_v29 = vadd.f32 %v3580_v44, %v3615_v1 }
 0x1c6   :  { %v1312_v62 = vmax.f32 %v2449_v56, 0.0  ;;  %2374 = vmatprep.subr.bf16.mxu1 %v2733_v27 }
 0x1c7   :  { %v1313_v3 = vmax.f32 %v2451_v31, 0.0 }
 0x1c8   :  { %v1340_v4 = vpack.c.bf16 %v1312_v62, %v1310_v32  ;;  %v933_v32 = vadd.f32 %v3584_v46, %v3615_v1  ;;  %v941_v46 = vadd.f32 %v3590_v49, %v3617_v2 }
 0x1c9   :  { %v1341_v5 = vpack.c.bf16 %v1313_v3, %v1311_v0  ;;  %v1247_v6 = vpop.f32.mrb[8].mxu0  ;;  %2375 = vmatpush3.bf16.msra.mxu1 %v2733_v27 }
 0x1ca   :  { %v2453_v35 = vadd.f32 %v1247_v6, %v909_v63  ;;  %v1249_v8 = vpop.f32.mrb[9].mxu0  ;;  %2376 = vmatprep.subr.bf16.mxu1 %v2734_v33  ;;  %v939_v6 = vadd.f32 %v3588_v48, %v3615_v1 }
 0x1cb   :  { %v2455_v9 = vadd.f32 %v1249_v8, %v911_v34  ;;  %v1251_v10 = vpop.f32.mrb[10].mxu0  ;;  %1529 = vmatprep.mubr.bf16.mxu1 %v1341_v5 }
 0x1cc   :  { %v2457_v11 = vadd.f32 %v1251_v10, %v913_v7  ;;  %v1253_v12 = vpop.f32.mrb[11].mxu0  ;;  %1530 = vmatmul.mubr.bf16.gmra.mrb[36].mxu1 %v1340_v4  ;;  %v1314_v13 = vmax.f32 %v2453_v35, 0.0 }
 0x1cd   :  { %v2459_v37 = vadd.f32 %v1253_v12, %v915_v36  ;;  %2377 = vmatpush3.bf16.msra.mxu1 %v2734_v33  ;;  %v1315_v38 = vmax.f32 %v2455_v9, 0.0  ;;  %v935_v33 = vadd.f32 %v3586_v47, %v3617_v2  ;;  %v943_v9 = vadd.f32 %v3592_v50, %v3615_v1 }
 0x1ce   :  { %v1316_v14 = vmax.f32 %v2457_v11, 0.0  ;;  %v945_v12 = vadd.f32 %v3594_v51, %v3617_v2  ;;  %v951_v50 = vadd.f32 %v3598_v53, %v3617_v2 }
 0x1cf   :  { %v1317_v16 = vmax.f32 %v2459_v37, 0.0 }
 0x1d0   :  { %v1342_v18 = vpack.c.bf16 %v1316_v14, %v1314_v13 }
 0x1d1   :  { %v1343_v39 = vpack.c.bf16 %v1317_v16, %v1315_v38  ;;  %v1257_v19 = vpop.f32.mrb[12].mxu0  ;;  %v949_v16 = vadd.f32 %v3596_v52, %v3615_v1 }
 0x1d2   :  { %v2461_v21 = vadd.f32 %v1257_v19, %v919_v15  ;;  %v1259_v22 = vpop.f32.mrb[13].mxu0 }
 0x1d3   :  { %v2463_v24 = vadd.f32 %v1259_v22, %v921_v17  ;;  %v1261_v25 = vpop.f32.mrb[14].mxu0  ;;  %1537 = vmatprep.mubr.bf16.mxu1 %v1343_v39 }
 0x1d4   :  { %v2465_v40 = vadd.f32 %v1261_v25, %v923_v20  ;;  %v1263_v26 = vpop.f32.mrb[15].mxu0  ;;  %1538 = vmatmul.mubr.bf16.gmra.mrb[40].mxu1 %v1342_v18  ;;  %v1318_v28 = vmax.f32 %v2461_v21, 0.0  ;;  %v953_v20 = vadd.f32 %v3600_v54, %v3615_v1  ;;  %v961_v54 = vadd.f32 %v3606_v58, %v3617_v2 }
 0x1d5   :  { %v2467_v27 = vadd.f32 %v1263_v26, %v925_v23  ;;  %v1319_v30 = vmax.f32 %v2463_v24, 0.0  ;;  %v955_v23 = vadd.f32 %v3602_v55, %v3617_v2 }
 0x1d6   :  { %v1320_v41 = vmax.f32 %v2465_v40, 0.0 }
 0x1d7   :  { %v1321_v56 = vmax.f32 %v2467_v27, 0.0 }
 0x1d8   :  { %v1344_v61 = vpack.c.bf16 %v1320_v41, %v1318_v28  ;;  %v959_v28 = vadd.f32 %v3604_v57, %v3615_v1 }
 0x1d9   :  { %v1345_v31 = vpack.c.bf16 %v1321_v56, %v1319_v30  ;;  %v1267_v43 = vpop.f32.mrb[16].mxu0 }
 0x1da   :  { %v2469_v62 = vadd.f32 %v1267_v43, %v929_v29  ;;  %v1269_v63 = vpop.f32.mrb[17].mxu0  ;;  %v965_v43 = vadd.f32 %v3610_v60, %v3617_v2  ;;  %v2737_v60 = vld [vmem:[#allocation2 + $0x28] sm:$0xff]   ;;  %v2738_v2 = vld [vmem:[#allocation2 + $0x30] sm:$0xff]  }
 0x1db   :  { %v2471_v0 = vadd.f32 %v1269_v63, %v931_v42  ;;  %v1271_v3 = vpop.f32.mrb[18].mxu0  ;;  %1545 = vmatprep.mubr.bf16.mxu1 %v1345_v31  ;;  %v963_v42 = vadd.f32 %v3608_v59, %v3615_v1  ;;  %v2735_v59 = vld [vmem:[#allocation2 + $0x18] sm:$0xff]   ;;  %v2736_v1 = vld [vmem:[#allocation2 + $0x20] sm:$0xff]  }
 0x1dc   :  { %v2473_v44 = vadd.f32 %v1271_v3, %v933_v32  ;;  %v1273_v34 = vpop.f32.mrb[19].mxu0  ;;  %1546 = vmatmul.mubr.bf16.gmra.mrb[44].mxu1 %v1344_v61  ;;  %v1322_v5 = vmax.f32 %v2469_v62, 0.0  ;;  %2378 = vmatprep.subr.bf16.mxu1 %v2735_v59 }
 0x1dd   :  { %v2475_v4 = vadd.f32 %v1273_v34, %v935_v33  ;;  %v1323_v7 = vmax.f32 %v2471_v0, 0.0  ;;  %2379 = vmatpush3.bf16.msra.mxu1 %v2735_v59 }
 0x1de   :  { %v1324_v45 = vmax.f32 %v2473_v44, 0.0  ;;  %2380 = vmatprep.subr.bf16.mxu1 %v2736_v1 }
 0x1df   :  { %v1325_v35 = vmax.f32 %v2475_v4, 0.0 }
 0x1e0   :  { %v1346_v8 = vpack.c.bf16 %v1324_v45, %v1322_v5  ;;  %v2739_v5 = vld [vmem:[#allocation2 + $0x38] sm:$0xff]   ;;  %v2740_v45 = vld [vmem:[#allocation4] sm:$0xff]  }
 0x1e1   :  { %v1347_v36 = vpack.c.bf16 %v1325_v35, %v1323_v7  ;;  %v1277_v47 = vpop.f32.mrb[20].mxu0  ;;  %2381 = vmatpush3.bf16.msra.mxu1 %v2736_v1  ;;  %v3679_v7 = vld [vmem:[%s3731_s4] ss:$0 sm:$0xff] }
 0x1e2   :  { %v2477_v10 = vadd.f32 %v1277_v47, %v939_v6  ;;  %v1279_v11 = vpop.f32.mrb[21].mxu0  ;;  %2382 = vmatprep.subr.bf16.mxu1 %v2737_v60 }
 0x1e3   :  { %v2479_v37 = vadd.f32 %v1279_v11, %v941_v46  ;;  %v1281_v13 = vpop.f32.mrb[22].mxu0  ;;  %1553 = vmatprep.mubr.bf16.mxu1 %v1347_v36 }
 0x1e4   :  { %v2481_v48 = vadd.f32 %v1281_v13, %v943_v9  ;;  %v1283_v14 = vpop.f32.mrb[23].mxu0  ;;  %1554 = vmatmul.mubr.bf16.gmra.mrb[48].mxu1 %v1346_v8  ;;  %v1326_v38 = vmax.f32 %v2477_v10, 0.0 }
 0x1e5   :  { %v2483_v15 = vadd.f32 %v1283_v14, %v945_v12  ;;  %v1327_v17 = vmax.f32 %v2479_v37, 0.0  ;;  %2383 = vmatpush3.bf16.msra.mxu1 %v2737_v60 }
 0x1e6   :  { %v1328_v49 = vmax.f32 %v2481_v48, 0.0  ;;  %2384 = vmatprep.subr.bf16.mxu1 %v2738_v2 }
 0x1e7   :  { %v1329_v18 = vmax.f32 %v2483_v15, 0.0 }
 0x1e8   :  { %v1348_v39 = vpack.c.bf16 %v1328_v49, %v1326_v38 }
 0x1e9   :  { %v1349_v19 = vpack.c.bf16 %v1329_v18, %v1327_v17  ;;  %v1287_v51 = vpop.f32.mrb[24].mxu0  ;;  %2385 = vmatpush3.bf16.msra.mxu1 %v2738_v2 }
 0x1ea   :  { %v2485_v21 = vadd.f32 %v1287_v51, %v949_v16  ;;  %v1289_v22 = vpop.f32.mrb[25].mxu0  ;;  %2386 = vmatprep.subr.bf16.mxu1 %v2739_v5 }
 0x1eb   :  { %v2487_v24 = vadd.f32 %v1289_v22, %v951_v50  ;;  %v1291_v25 = vpop.f32.mrb[26].mxu0  ;;  %1561 = vmatprep.mubr.bf16.mxu1 %v1349_v19  ;;  %v2741_v22 = vld [vmem:[#allocation4 + $0x8] sm:$0xff]  }
 0x1ec   :  { %v2489_v52 = vadd.f32 %v1291_v25, %v953_v20  ;;  %v1293_v40 = vpop.f32.mrb[27].mxu0  ;;  %1562 = vmatmul.mubr.bf16.gmra.mrb[52].mxu1 %v1348_v39  ;;  %v1330_v27 = vmax.f32 %v2485_v21, 0.0 }
 0x1ed   :  { %v2491_v26 = vadd.f32 %v1293_v40, %v955_v23  ;;  %v1331_v41 = vmax.f32 %v2487_v24, 0.0  ;;  %2387 = vmatpush3.bf16.msra.mxu1 %v2739_v5  ;;  %v2742_v40 = vld [vmem:[#allocation4 + $0x10] sm:$0xff]  }
 0x1ee   :  { %v1332_v53 = vmax.f32 %v2489_v52, 0.0  ;;  %2404 = vmatprep.subr.bf16.mxu1 %v2740_v45 }
 0x1ef   :  { %v1333_v29 = vmax.f32 %v2491_v26, 0.0 }
 0x1f0   :  { %v1350_v30 = vpack.c.bf16 %v1332_v53, %v1330_v27 }
 0x1f1   :  { %v1351_v56 = vpack.c.bf16 %v1333_v29, %v1331_v41  ;;  %v1297_v55 = vpop.f32.mrb[28].mxu0 }
 0x1f2   :  { %v2493_v61 = vadd.f32 %v1297_v55, %v959_v28  ;;  %v1299_v31 = vpop.f32.mrb[29].mxu0 }
 0x1f3   :  { %v2495_v32 = vadd.f32 %v1299_v31, %v961_v54  ;;  %v1301_v62 = vpop.f32.mrb[30].mxu0  ;;  %1569 = vmatprep.mubr.bf16.mxu1 %v1351_v56  ;;  %v2744_v31 = vld [vmem:[#allocation4 + $0x20] sm:$0xff]  }
 0x1f4   :  { %v2497_v57 = vadd.f32 %v1301_v62, %v963_v42  ;;  %v1303_v63 = vpop.f32.mrb[31].mxu0  ;;  %1570 = vmatmul.mubr.bf16.gmra.mrb[56].mxu1 %v1350_v30  ;;  %v1334_v0 = vmax.f32 %v2493_v61, 0.0  ;;  %v2743_v30 = vld [vmem:[#allocation4 + $0x18] sm:$0xff]  }
 0x1f5   :  { %v2499_v33 = vadd.f32 %v1303_v63, %v965_v43  ;;  %v1335_v3 = vmax.f32 %v2495_v32, 0.0 }
 0x1f6   :  { %v1336_v58 = vmax.f32 %v2497_v57, 0.0 }
 0x1f7   :  { %v1337_v44 = vmax.f32 %v2499_v33, 0.0 }
 0x1f8   :  { %v1352_v34 = vpack.c.bf16 %v1336_v58, %v1334_v0  ;;  %v2745_v58 = vld [vmem:[#allocation4 + $0x28] sm:$0xff]  }
 0x1f9   :  { %v1353_v4 = vpack.c.bf16 %v1337_v44, %v1335_v3 }
 0x1fb   :  { %1577 = vmatprep.mubr.bf16.mxu1 %v1353_v4 }
 0x1fc   :  { %1578 = vmatmul.mubr.bf16.gmra.mrb[60].mxu1 %v1352_v34 }
 0x297   :  { %v2292_v6 = vpop.f32.mrb[32].mxu1 }
 0x298   :  { %v2293_v35 = vpop.f32.mrb[33].mxu1 }
 0x299   :  { %v2294_v46 = vadd.f32 %v2293_v35, %v2292_v6  ;;  %v2295_v8 = vpop.f32.mrb[34].mxu1 }
 0x29a   :  { %v2296_v36 = vpop.f32.mrb[35].mxu1 }
 0x29b   :  { %v1524_v47 = vadd.f32 %v2294_v46, %v3679_v7  ;;  %v2297_v9 = vadd.f32 %v2296_v36, %v2295_v8 }
 0x29d   :  { %v1527_v10 = vadd.f32 %v2297_v9, %v3679_v7  ;;  %v1586_v11 = vmax.f32 %v1524_v47, 0.0 }
 0x29f   :  { %v1587_v12 = vmax.f32 %v1527_v10, 0.0  ;;  %v2298_v37 = vpop.f32.mrb[36].mxu1 }
 0x2a0   :  { %v2299_v13 = vpop.f32.mrb[37].mxu1 }
 0x2a1   :  { %v2300_v48 = vadd.f32 %v2299_v13, %v2298_v37  ;;  %v2301_v14 = vpop.f32.mrb[38].mxu1  ;;  %v1602_v15 = vpack.c.bf16 %v1587_v12, %v1586_v11 }
 0x2a2   :  { %v2302_v38 = vpop.f32.mrb[39].mxu1 }
 0x2a3   :  { %v1532_v49 = vadd.f32 %v2300_v48, %v3679_v7  ;;  %v2303_v16 = vadd.f32 %v2302_v38, %v2301_v14  ;;  %2388 = vmatprep.mubr.bf16.mxu1 %v1602_v15 }
 0x2a5   :  { %v1535_v17 = vadd.f32 %v2303_v16, %v3679_v7  ;;  %v1588_v18 = vmax.f32 %v1532_v49, 0.0 }
 0x2a7   :  { %v1589_v50 = vmax.f32 %v1535_v17, 0.0  ;;  %v2304_v39 = vpop.f32.mrb[40].mxu1 }
 0x2a8   :  { %v2305_v19 = vpop.f32.mrb[41].mxu1 }
 0x2a9   :  { %v1603_v51 = vpack.c.bf16 %v1589_v50, %v1588_v18  ;;  %v2306_v20 = vadd.f32 %v2305_v19, %v2304_v39  ;;  %v2307_v21 = vpop.f32.mrb[42].mxu1 }
 0x2aa   :  { %v2308_v23 = vpop.f32.mrb[43].mxu1 }
 0x2ab   :  { %v1540_v24 = vadd.f32 %v2306_v20, %v3679_v7  ;;  %v2309_v25 = vadd.f32 %v2308_v23, %v2307_v21  ;;  %2389 = vmatmul.mubr.bf16.vlgmr.msra.gmra.mrb[64].mxu1 %v1603_v51 }
 0x2ac   :  { %2405 = vmatpush3.bf16.msra.mxu1 %v2740_v45 }
 0x2ad   :  { %v1543_v52 = vadd.f32 %v2309_v25, %v3679_v7  ;;  %2406 = vmatprep.subr.bf16.mxu1 %v2741_v22  ;;  %v1590_v26 = vmax.f32 %v1540_v24, 0.0 }
 0x2af   :  { %v1591_v27 = vmax.f32 %v1543_v52, 0.0  ;;  %v2310_v53 = vpop.f32.mrb[44].mxu1  ;;  %v2746_v52 = vld [vmem:[#allocation4 + $0x30] sm:$0xff]  }
 0x2b0   :  { %v2311_v28 = vpop.f32.mrb[45].mxu1  ;;  %2407 = vmatpush3.bf16.msra.mxu1 %v2741_v22 }
 0x2b1   :  { %v2312_v41 = vadd.f32 %v2311_v28, %v2310_v53  ;;  %v2313_v29 = vpop.f32.mrb[46].mxu1  ;;  %v1604_v54 = vpack.c.bf16 %v1591_v27, %v1590_v26  ;;  %2408 = vmatprep.subr.bf16.mxu1 %v2742_v40  ;;  %v2179_v26 = vld [vmem:[%s3733_s6] ss:$0 sm:$0xff] }
 0x2b2   :  { %v2314_v56 = vpop.f32.mrb[47].mxu1 }
 0x2b3   :  { %v1548_v55 = vadd.f32 %v2312_v41, %v3679_v7  ;;  %v2315_v42 = vadd.f32 %v2314_v56, %v2313_v29  ;;  %2392 = vmatprep.mubr.bf16.mxu1 %v1604_v54 }
 0x2b4   :  { %2409 = vmatpush3.bf16.msra.mxu1 %v2742_v40  ;;  %v2747_v40 = vld [vmem:[#allocation4 + $0x38] sm:$0xff]  }
 0x2b5   :  { %v1551_v61 = vadd.f32 %v2315_v42, %v3679_v7  ;;  %2410 = vmatprep.subr.bf16.mxu1 %v2743_v30  ;;  %v1592_v43 = vmax.f32 %v1548_v55, 0.0 }
 0x2b7   :  { %v1593_v32 = vmax.f32 %v1551_v61, 0.0  ;;  %v2316_v62 = vpop.f32.mrb[48].mxu1 }
 0x2b8   :  { %v2317_v57 = vpop.f32.mrb[49].mxu1  ;;  %2411 = vmatpush3.bf16.msra.mxu1 %v2743_v30 }
 0x2b9   :  { %v2318_v63 = vadd.f32 %v2317_v57, %v2316_v62  ;;  %v2319_v33 = vpop.f32.mrb[50].mxu1  ;;  %v1605_v0 = vpack.c.bf16 %v1593_v32, %v1592_v43  ;;  %2412 = vmatprep.subr.bf16.mxu1 %v2744_v31 }
 0x2ba   :  { %v2320_v3 = vpop.f32.mrb[51].mxu1 }
 0x2bb   :  { %v1556_v44 = vadd.f32 %v2318_v63, %v3679_v7  ;;  %v2321_v34 = vadd.f32 %v2320_v3, %v2319_v33  ;;  %2393 = vmatmul.mubr.bf16.gmra.mrb[68].mxu1 %v1605_v0 }
 0x2bc   :  { %2413 = vmatpush3.bf16.msra.mxu1 %v2744_v31 }
 0x2bd   :  { %v1559_v4 = vadd.f32 %v2321_v34, %v3679_v7  ;;  %2414 = vmatprep.subr.bf16.mxu1 %v2745_v58  ;;  %v1594_v59 = vmax.f32 %v1556_v44, 0.0 }
 0x2bf   :  { %v1595_v1 = vmax.f32 %v1559_v4, 0.0  ;;  %v2322_v60 = vpop.f32.mrb[52].mxu1 }
 0x2c0   :  { %v2323_v2 = vpop.f32.mrb[53].mxu1  ;;  %2415 = vmatpush3.bf16.msra.mxu1 %v2745_v58 }
 0x2c1   :  { %v2324_v5 = vadd.f32 %v2323_v2, %v2322_v60  ;;  %v2325_v45 = vpop.f32.mrb[54].mxu1  ;;  %v1606_v6 = vpack.c.bf16 %v1595_v1, %v1594_v59  ;;  %2416 = vmatprep.subr.bf16.mxu1 %v2746_v52 }
 0x2c2   :  { %v2326_v35 = vpop.f32.mrb[55].mxu1 }
 0x2c3   :  { %v1564_v46 = vadd.f32 %v2324_v5, %v3679_v7  ;;  %v2327_v8 = vadd.f32 %v2326_v35, %v2325_v45  ;;  %2396 = vmatprep.mubr.bf16.mxu1 %v1606_v6 }
 0x2c4   :  { %2417 = vmatpush3.bf16.msra.mxu1 %v2746_v52 }
 0x2c5   :  { %v1567_v36 = vadd.f32 %v2327_v8, %v3679_v7  ;;  %v1596_v47 = vmax.f32 %v1564_v46, 0.0  ;;  %2418 = vmatprep.subr.bf16.mxu1 %v2747_v40 }
 0x2c7   :  { %v1597_v9 = vmax.f32 %v1567_v36, 0.0  ;;  %v2328_v10 = vpop.f32.mrb[56].mxu1 }
 0x2c8   :  { %v2329_v11 = vpop.f32.mrb[57].mxu1  ;;  %2419 = vmatpush3.bf16.msra.mxu1 %v2747_v40 }
 0x2c9   :  { %v2330_v12 = vadd.f32 %v2329_v11, %v2328_v10  ;;  %v2331_v37 = vpop.f32.mrb[58].mxu1  ;;  %v1607_v13 = vpack.c.bf16 %v1597_v9, %v1596_v47 }
 0x2ca   :  { %v2332_v48 = vpop.f32.mrb[59].mxu1 }
 0x2cb   :  { %v1572_v14 = vadd.f32 %v2330_v12, %v3679_v7  ;;  %v2333_v15 = vadd.f32 %v2332_v48, %v2331_v37  ;;  %2397 = vmatmul.mubr.bf16.gmra.mrb[72].mxu1 %v1607_v13 }
 0x2cd   :  { %v1575_v38 = vadd.f32 %v2333_v15, %v3679_v7  ;;  %v1598_v49 = vmax.f32 %v1572_v14, 0.0 }
 0x2cf   :  { %v1599_v16 = vmax.f32 %v1575_v38, 0.0  ;;  %v2334_v17 = vpop.f32.mrb[60].mxu1 }
 0x2d0   :  { %v2335_v18 = vpop.f32.mrb[61].mxu1 }
 0x2d1   :  { %v2336_v50 = vadd.f32 %v2335_v18, %v2334_v17  ;;  %v2337_v39 = vpop.f32.mrb[62].mxu1  ;;  %v1608_v19 = vpack.c.bf16 %v1599_v16, %v1598_v49 }
 0x2d2   :  { %v2338_v51 = vpop.f32.mrb[63].mxu1 }
 0x2d3   :  { %v1580_v20 = vadd.f32 %v2336_v50, %v3679_v7  ;;  %v2339_v21 = vadd.f32 %v2338_v51, %v2337_v39  ;;  %2400 = vmatprep.mubr.bf16.mxu1 %v1608_v19 }
 0x2d5   :  { %v1583_v22 = vadd.f32 %v2339_v21, %v3679_v7  ;;  %v1600_v23 = vmax.f32 %v1580_v20, 0.0 }
 0x2d7   :  { %v1601_v24 = vmax.f32 %v1583_v22, 0.0  ;;  %v2188_v22 = vld [vmem:[%s3735_s8] ss:$0 sm:$0xff] }
 0x2d9   :  { %v1609_v25 = vpack.c.bf16 %v1601_v24, %v1600_v23 }
 0x2db   :  { %2401 = vmatmul.mubr.bf16.gmra.mrb[76].mxu1 %v1609_v25 }
 0x37e   :  { %v2390_v27 = vpop.f32.mrb[64].mxu1 }
 0x37f   :  { %v1724_v53 = vadd.f32 %v2390_v27, %v2179_v26  ;;  %v1715_v28 = vpop.f32.mrb[65].mxu1 }
 0x380   :  { %v1716_v41 = vadd.f32 %v2179_v26, %v1715_v28  ;;  %v2391_v29 = vpop.f32.mrb[66].mxu1 }
 0x381   :  { %v1727_v7 = vadd.f32 %v2391_v29, %v2179_v26  ;;  %v1718_v54 = vpop.f32.mrb[67].mxu1  ;;  %v1780_v56 = vmax.f32 %v1724_v53, 0.0 }
 0x382   :  { %v1719_v30 = vadd.f32 %v2179_v26, %v1718_v54  ;;  %v1778_v42 = vmax.f32 %v1716_v41, 0.0 }
 0x383   :  { %v1781_v55 = vmax.f32 %v1727_v7, 0.0 }
 0x384   :  { %v1779_v61 = vmax.f32 %v1719_v30, 0.0 }
 0x385   :  { %v1795_v31 = vpack.c.bf16 %v1781_v55, %v1780_v56 }
 0x386   :  { %v1794_v43 = vpack.c.bf16 %v1779_v61, %v1778_v42 }
 0x388   :  { %2420 = vmatprep.mubr.bf16.mxu1 %v1794_v43 }
 0x389   :  { %2421 = vmatmul.mubr.bf16.vlgmr.msra.gmra.mrb[80].mxu1 %v1795_v31 }
 0x38e   :  { %v2394_v32 = vpop.f32.mrb[68].mxu1 }
 0x38f   :  { %v1740_v62 = vadd.f32 %v2394_v32, %v2179_v26  ;;  %v1731_v57 = vpop.f32.mrb[69].mxu1 }
 0x390   :  { %v1732_v63 = vadd.f32 %v2179_v26, %v1731_v57  ;;  %v2395_v33 = vpop.f32.mrb[70].mxu1 }
 0x391   :  { %v1743_v0 = vadd.f32 %v2395_v33, %v2179_v26  ;;  %v1734_v58 = vpop.f32.mrb[71].mxu1  ;;  %v1784_v44 = vmax.f32 %v1740_v62, 0.0 }
 0x392   :  { %v1735_v3 = vadd.f32 %v2179_v26, %v1734_v58  ;;  %v1782_v4 = vmax.f32 %v1732_v63, 0.0 }
 0x393   :  { %v1785_v34 = vmax.f32 %v1743_v0, 0.0 }
 0x394   :  { %v1783_v59 = vmax.f32 %v1735_v3, 0.0 }
 0x395   :  { %v1797_v1 = vpack.c.bf16 %v1785_v34, %v1784_v44 }
 0x396   :  { %v1796_v60 = vpack.c.bf16 %v1783_v59, %v1782_v4 }
 0x398   :  { %2424 = vmatprep.mubr.bf16.mxu1 %v1796_v60 }
 0x399   :  { %2425 = vmatmul.mubr.bf16.gmra.mrb[84].mxu1 %v1797_v1 }
 0x39e   :  { %v2398_v2 = vpop.f32.mrb[72].mxu1 }
 0x39f   :  { %v1756_v5 = vadd.f32 %v2398_v2, %v2179_v26  ;;  %v1747_v45 = vpop.f32.mrb[73].mxu1 }
 0x3a0   :  { %v1748_v6 = vadd.f32 %v2179_v26, %v1747_v45  ;;  %v2399_v35 = vpop.f32.mrb[74].mxu1 }
 0x3a1   :  { %v1759_v46 = vadd.f32 %v2399_v35, %v2179_v26  ;;  %v1750_v8 = vpop.f32.mrb[75].mxu1  ;;  %v1788_v47 = vmax.f32 %v1756_v5, 0.0 }
 0x3a2   :  { %v1751_v36 = vadd.f32 %v2179_v26, %v1750_v8  ;;  %v1786_v10 = vmax.f32 %v1748_v6, 0.0 }
 0x3a3   :  { %v1789_v9 = vmax.f32 %v1759_v46, 0.0 }
 0x3a4   :  { %v1787_v11 = vmax.f32 %v1751_v36, 0.0 }
 0x3a5   :  { %v1799_v12 = vpack.c.bf16 %v1789_v9, %v1788_v47 }
 0x3a6   :  { %v1798_v37 = vpack.c.bf16 %v1787_v11, %v1786_v10 }
 0x3a8   :  { %2428 = vmatprep.mubr.bf16.mxu1 %v1798_v37 }
 0x3a9   :  { %2429 = vmatmul.mubr.bf16.gmra.mrb[88].mxu1 %v1799_v12 }
 0x3ae   :  { %v2402_v13 = vpop.f32.mrb[76].mxu1 }
 0x3af   :  { %v1772_v48 = vadd.f32 %v2402_v13, %v2179_v26  ;;  %v1763_v14 = vpop.f32.mrb[77].mxu1 }
 0x3b0   :  { %v1764_v15 = vadd.f32 %v2179_v26, %v1763_v14  ;;  %v2403_v38 = vpop.f32.mrb[78].mxu1 }
 0x3b1   :  { %v1775_v49 = vadd.f32 %v2403_v38, %v2179_v26  ;;  %v1766_v16 = vpop.f32.mrb[79].mxu1  ;;  %v1792_v18 = vmax.f32 %v1772_v48, 0.0 }
 0x3b2   :  { %v1767_v17 = vadd.f32 %v2179_v26, %v1766_v16  ;;  %v1790_v39 = vmax.f32 %v1764_v15, 0.0 }
 0x3b3   :  { %v1793_v50 = vmax.f32 %v1775_v49, 0.0 }
 0x3b4   :  { %v1791_v19 = vmax.f32 %v1767_v17, 0.0 }
 0x3b5   :  { %v1801_v51 = vpack.c.bf16 %v1793_v50, %v1792_v18 }
 0x3b6   :  { %v1800_v20 = vpack.c.bf16 %v1791_v19, %v1790_v39 }
 0x3b8   :  { %2432 = vmatprep.mubr.bf16.mxu1 %v1800_v20 }
 0x3b9   :  { %2433 = vmatmul.mubr.bf16.gmra.mrb[92].mxu1 %v1801_v51 }
 0x45c   :  { %v2422_v21 = vpop.f32.mrb[80].mxu1 }
 0x45d   :  { %v1907_v23 = vpop.f32.mrb[81].mxu1  ;;  %v1916_v25 = vadd.f32 %v2422_v21, %v2188_v22 }
 0x45e   :  { %v2423_v24 = vpop.f32.mrb[82].mxu1  ;;  %v1908_v27 = vadd.f32 %v2188_v22, %v1907_v23 }
 0x45f   :  { %v1919_v52 = vadd.f32 %v2423_v24, %v2188_v22  ;;  %v1910_v40 = vpop.f32.mrb[83].mxu1 }
 0x460   :  { %v1911_v26 = vadd.f32 %v2188_v22, %v1910_v40 }
 0x461   :  { %v2237_v53 = vpack.c.bf16 %v1919_v52, %v1916_v25 }
 0x462   :  { %v2232_v28 = vpack.c.bf16 %v1911_v26, %v1908_v27 }
 0x463   :  { %2269 = vst [vmem:[%s3736_s9 + $0x8] sm:$0xff] %v2237_v53  }
 0x464   :  { %2233 = vst [vmem:[%s3736_s9] sm:$0xff] %v2232_v28  }
 0x46c   :  { %v2426_v41 = vpop.f32.mrb[84].mxu1 }
 0x46d   :  { %v1923_v29 = vpop.f32.mrb[85].mxu1  ;;  %v1932_v54 = vadd.f32 %v2426_v41, %v2188_v22 }
 0x46e   :  { %v2427_v7 = vpop.f32.mrb[86].mxu1  ;;  %v1924_v55 = vadd.f32 %v2188_v22, %v1923_v29 }
 0x46f   :  { %v1935_v30 = vadd.f32 %v2427_v7, %v2188_v22  ;;  %v1926_v56 = vpop.f32.mrb[87].mxu1 }
 0x470   :  { %v1927_v42 = vadd.f32 %v2188_v22, %v1926_v56 }
 0x471   :  { %v2247_v61 = vpack.c.bf16 %v1935_v30, %v1932_v54 }
 0x472   :  { %v2242_v31 = vpack.c.bf16 %v1927_v42, %v1924_v55 }
 0x473   :  { %2271 = vst [vmem:[%s3736_s9 + $0x18] sm:$0xff] %v2247_v61  }
 0x474   :  { %2270 = vst [vmem:[%s3736_s9 + $0x10] sm:$0xff] %v2242_v31  }
 0x47c   :  { %v2430_v43 = vpop.f32.mrb[88].mxu1 }
 0x47d   :  { %v1939_v32 = vpop.f32.mrb[89].mxu1  ;;  %v1948_v57 = vadd.f32 %v2430_v43, %v2188_v22 }
 0x47e   :  { %v2431_v62 = vpop.f32.mrb[90].mxu1  ;;  %v1940_v0 = vadd.f32 %v2188_v22, %v1939_v32 }
 0x47f   :  { %v1951_v63 = vadd.f32 %v2431_v62, %v2188_v22  ;;  %v1942_v33 = vpop.f32.mrb[91].mxu1 }
 0x480   :  { %v1943_v58 = vadd.f32 %v2188_v22, %v1942_v33 }
 0x481   :  { %v2257_v3 = vpack.c.bf16 %v1951_v63, %v1948_v57 }
 0x482   :  { %v2252_v44 = vpack.c.bf16 %v1943_v58, %v1940_v0 }
 0x483   :  { %2273 = vst [vmem:[%s3736_s9 + $0x28] sm:$0xff] %v2257_v3  }
 0x484   :  { %2272 = vst [vmem:[%s3736_s9 + $0x20] sm:$0xff] %v2252_v44  }
 0x48c   :  { %v2434_v34 = vpop.f32.mrb[92].mxu1 }
 0x48d   :  { %v1955_v4 = vpop.f32.mrb[93].mxu1  ;;  %v1964_v1 = vadd.f32 %v2434_v34, %v2188_v22 }
 0x48e   :  { %v2435_v59 = vpop.f32.mrb[94].mxu1  ;;  %v1956_v5 = vadd.f32 %v2188_v22, %v1955_v4 }
 0x48f   :  { %v1967_v60 = vadd.f32 %v2435_v59, %v2188_v22  ;;  %v1958_v2 = vpop.f32.mrb[95].mxu1 }
 0x490   :  { %v1959_v45 = vadd.f32 %v2188_v22, %v1958_v2 }
 0x491   :  { %v2267_v6 = vpack.c.bf16 %v1967_v60, %v1964_v1 }
 0x492   :  { %v2262_v35 = vpack.c.bf16 %v1959_v45, %v1956_v5 }
 0x493   :  { %2275 = vst [vmem:[%s3736_s9 + $0x38] sm:$0xff] %v2267_v6  }
 0x494   :  { %2274 = vst [vmem:[%s3736_s9 + $0x30] sm:$0xff] %v2262_v35  }
 0x495   :  { %2054 = vsyncpa [#allocation3], 1 }
 0x496   :  { %2055 = vsyncpa [#allocation5], 1 }

</bundles_post_ra>
